<compile_context>
chip_gen: v5e
topology: v5e:2x2
jax: 0.10.0
libtpu: 0.0.40
codegen_flags: <defaults>
</compile_context>

<pallas_src>
import jax
import jax.numpy as jnp
from jax.experimental import pallas as pl

# ----------------------------- model config ---------------------------------
INPUT_DIM = 16
HIDDEN_DIM = 32
OUTPUT_DIM = 8
N_LAYERS = 2
BATCH = 8
SEQ = 8


# ----------------------------- Pallas kernel --------------------------------
def lstm_net_kernel(x_ref, state_ref, wblk_ref, slab_ref, out_ref):
    TB, D = x_ref.shape
    B = state_ref.shape[0]
    T = TB // B
    H = state_ref.shape[1] // 4
    G = 4 * H

    # --- static slices of the packed parameter slab --------------------------
    wih0 = slab_ref[0:D, :]                    # (D, 4H)   layer-0 input proj
    b0 = slab_ref[D:D + 1, :]                  # (1, 4H)   fused bias, layer 0
    b1 = slab_ref[D + 1:D + 2, :]              # (1, 4H)   fused bias, layer 1
    fcw = slab_ref[D + 2:D + 2 + H, :]         # (H, 128)  fc_w^T zero-padded
    fcb = slab_ref[D + 2 + H:D + 3 + H, :]     # (1, 128)  fc_b   zero-padded
    w_blk = wblk_ref[...]                      # (2H, 8H)  fused recurrence wt

    # --- initial state: one lane-dense (B,128) load, sliced once -------------
    st = state_ref[...]
    h0 = st[:, 0:H]
    h1 = st[:, H:2 * H]
    c0 = st[:, 2 * H:3 * H]
    c1 = st[:, 3 * H:4 * H]

    # --- hoisted layer-0 input projection (+ fused bias), out of the loop ----
    gx0 = jnp.dot(x_ref[...], wih0,
                  preferred_element_type=jnp.float32) + b0        # (T*B, 4H)

    def cell(gates, c):
        # ONE whole-vreg EUP pass; g-columns were pre-scaled by 2 at init so
        # tanh(g_pre) = 2*sigmoid(2*g_pre) - 1 (no tanh(gates) pass).
        # Gate order [f, i, g, o]: f is the offset-0 slice, aligned with c.
        sig = jax.nn.sigmoid(gates)
        f_g = sig[:, 0:H]
        i_g = sig[:, H:2 * H]
        g_g = 2.0 * sig[:, 2 * H:3 * H] - 1.0
        o_g = sig[:, 3 * H:4 * H]
        c_new = f_g * c + i_g * g_g
        h_new = o_g * jnp.tanh(c_new)
        return h_new, c_new

    # --- interleaved two-layer recurrence: T+1 steps, ONE MXU call per step --
    # step s: layer-0 cell at time s (s < T), layer-1 cell at time s-1 (s >= 1)
    for s in range(T + 1):
        packed = jnp.concatenate([h0, h1], axis=1)                 # (B, 2H)
        gg = jnp.dot(packed, w_blk,
                     preferred_element_type=jnp.float32)           # (B, 8H)
        if s < T:
            # gx0 row slice is sublane-aligned (B == 8): exactly one vreg.
            gates0 = gg[:, 0:G] + gx0[s * B:(s + 1) * B, :]
            h0_new, c0 = cell(gates0, c0)
        if s >= 1:
            gates1 = gg[:, G:2 * G] + b1
            h1, c1 = cell(gates1, c1)
        if s < T:
            h0 = h0_new

    # --- epilogue: lane-dense (2B, 128) output slab ---------------------------
    out_ref[0:B, :] = jnp.concatenate(
        [h0, h1, c0, c1], axis=1).astype(out_ref.dtype)            # states
    fc_in = jnp.maximum(h1, 0.0)                                   # relu(out[:, -1])
    out_ref[B:2 * B, :] = (jnp.dot(fc_in, fcw,
                                   preferred_element_type=jnp.float32)
                           + fcb).astype(out_ref.dtype)            # FC head


# ----------------------------- wrapper ---------------------------------------
@jax.jit
def lstm_net_forward(x, h, packed_params):
    """Pallas implementation of LSTMNet.forward (grasp_flag=True path)."""
    w_blk, slab = packed_params
    h0_all, c0_all = h
    B, T, D = x.shape
    H = HIDDEN_DIM

    # Wrapper-side layout plumbing only (no compute): time-major input and a
    # lane-dense packed initial-state slab.
    x_tm = jnp.transpose(x, (1, 0, 2)).reshape(T * B, D)
    state = jnp.concatenate(
        [h0_all[0], h0_all[1], c0_all[0], c0_all[1]], axis=1)       # (B, 128)

    out_slab = pl.pallas_call(
        lstm_net_kernel,
        out_shape=jax.ShapeDtypeStruct((2 * B, 4 * H), jnp.float32),
    )(x_tm, state, w_blk, slab)

    out = out_slab[B:, :OUTPUT_DIM]
    h_n = jnp.stack([out_slab[:B, 0:H], out_slab[:B, H:2 * H]])
    c_n = jnp.stack([out_slab[:B, 2 * H:3 * H], out_slab[:B, 3 * H:4 * H]])
    return out, (h_n, c_n)


# ----------------------------- param init / packing --------------------------
def init_raw_params(key):
    """PyTorch-style uniform(-1/sqrt(H), 1/sqrt(H)) init; PyTorch layouts."""
    params = {"lstm": []}
    k = 1.0 / jnp.sqrt(jnp.float32(HIDDEN_DIM))
    for l in range(N_LAYERS):
        in_dim = INPUT_DIM if l == 0 else HIDDEN_DIM
        key, k1, k2, k3, k4 = jax.random.split(key, 5)
        w_ih = jax.random.uniform(k1, (4 * HIDDEN_DIM, in_dim), jnp.float32, -k, k)
        w_hh = jax.random.uniform(k2, (4 * HIDDEN_DIM, HIDDEN_DIM), jnp.float32, -k, k)
        b_ih = jax.random.uniform(k3, (4 * HIDDEN_DIM,), jnp.float32, -k, k)
        b_hh = jax.random.uniform(k4, (4 * HIDDEN_DIM,), jnp.float32, -k, k)
        params["lstm"].append((w_ih, w_hh, b_ih, b_hh))
    key, k5, k6 = jax.random.split(key, 3)
    params["fc_w"] = jax.random.uniform(k5, (OUTPUT_DIM, HIDDEN_DIM), jnp.float32, -k, k)
    params["fc_b"] = jax.random.uniform(k6, (OUTPUT_DIM,), jnp.float32, -k, k)
    return params


def _reorder_scale(w):
    """Rows are PyTorch gate order [i,f,g,o] along axis 0 (4H rows).
    Re-order to kernel order [f,i,g,o] and scale the g rows by 2 so that
    tanh(g_pre) can be computed as 2*sigmoid(2*g_pre) - 1."""
    i, f, g, o = jnp.split(w, 4, axis=0)
    return jnp.concatenate([f, i, 2.0 * g, o], axis=0)


def pack_params(raw):
    """Pack all weights into two lane-dense f32 slabs (done once at init)."""
    H = HIDDEN_DIM
    assert 4 * H == 128, "slab layout assumes 4*H == 128 lanes"
    (wih0, whh0, bih0, bhh0), (wih1, whh1, bih1, bhh1) = raw["lstm"]

    wih0_t = _reorder_scale(wih0).T                            # (D, 4H)
    whh0_t = _reorder_scale(whh0).T                            # (H, 4H)
    wih1_t = _reorder_scale(wih1).T                            # (H, 4H)
    whh1_t = _reorder_scale(whh1).T                            # (H, 4H)
    b0 = _reorder_scale((bih0 + bhh0)[:, None]).T              # (1, 4H)
    b1 = _reorder_scale((bih1 + bhh1)[:, None]).T              # (1, 4H)

    # Fused recurrence block weight: [h0 | h1] (B,2H) @ W_blk (2H,8H)
    w_blk = jnp.concatenate([
        jnp.concatenate([whh0_t, wih1_t], axis=1),
        jnp.concatenate([jnp.zeros((H, 4 * H), jnp.float32), whh1_t], axis=1),
    ], axis=0)                                                 # (2H, 8H)

    fcw_pad = jnp.zeros((H, 128), jnp.float32).at[:, :OUTPUT_DIM].set(raw["fc_w"].T)
    fcb_pad = jnp.zeros((1, 128), jnp.float32).at[:, :OUTPUT_DIM].set(raw["fc_b"][None, :])

    slab = jnp.concatenate([wih0_t, b0, b1, fcw_pad, fcb_pad], axis=0)
    pad = (-slab.shape[0]) % 8
    if pad:
        slab = jnp.concatenate([slab, jnp.zeros((pad, 128), jnp.float32)], axis=0)
    return w_blk, slab


# ----------------------------- pure-JAX reference ----------------------------
def ref_forward(x, h, raw):
    h0_all, c0_all = h
    H = HIDDEN_DIM
    inp = x
    hs, cs = [], []
    for l in range(N_LAYERS):
        wih, whh, bih, bhh = raw["lstm"][l]
        h_t, c_t = h0_all[l], c0_all[l]
        outs = []
        for t in range(inp.shape[1]):
            gates = inp[:, t] @ wih.T + h_t @ whh.T + bih + bhh
            i_g = jax.nn.sigmoid(gates[:, 0:H])
            f_g = jax.nn.sigmoid(gates[:, H:2 * H])
            g_g = jnp.tanh(gates[:, 2 * H:3 * H])
            o_g = jax.nn.sigmoid(gates[:, 3 * H:4 * H])
            c_t = f_g * c_t + i_g * g_g
            h_t = o_g * jnp.tanh(c_t)
            outs.append(h_t)
        inp = jnp.stack(outs, axis=1)
        hs.append(h_t)
        cs.append(c_t)
    out = jnp.maximum(inp[:, -1], 0.0) @ raw["fc_w"].T + raw["fc_b"]
    return out, (jnp.stack(hs), jnp.stack(cs))


# ----------------------------- main -------------------------------------------
if __name__ == "__main__":
    key = jax.random.PRNGKey(0)
    key, kx, kh, kc = jax.random.split(key, 4)
    raw = init_raw_params(key)
    packed = pack_params(raw)

    x = jax.random.normal(kx, (BATCH, SEQ, INPUT_DIM), jnp.float32)
    # non-zero initial states exercise every packed weight block
    h0 = 0.1 * jax.random.normal(kh, (N_LAYERS, BATCH, HIDDEN_DIM), jnp.float32)
    c0 = 0.1 * jax.random.normal(kc, (N_LAYERS, BATCH, HIDDEN_DIM), jnp.float32)

    out, (h_n, c_n) = lstm_net_forward(x, (h0, c0), packed)
    jax.block_until_ready((out, h_n, c_n))

    out_ref, (h_ref, c_ref) = ref_forward(x, (h0, c0), raw)
    assert jnp.allclose(out, out_ref, atol=1e-4, rtol=1e-4)
    assert jnp.allclose(h_n, h_ref, atol=1e-4, rtol=1e-4)
    assert jnp.allclose(c_n, c_ref, atol=1e-4, rtol=1e-4)

    print("KERNEL_OK")
</pallas_src>

<mosaic_0001>
module attributes {stable_mosaic.version = 11 : i64} {
  func.func @lstm_net_kernel(%arg0: memref<64x16xf32, #tpu.memory_space<vmem>>, %arg1: memref<8x128xf32, #tpu.memory_space<vmem>>, %arg2: memref<64x256xf32, #tpu.memory_space<vmem>>, %arg3: memref<56x128xf32, #tpu.memory_space<vmem>>, %arg4: memref<16x128xf32, #tpu.memory_space<vmem>>) attributes {dimension_semantics = [], scalar_prefetch = 0 : i64, scratch_operands = 0 : i64, tpu.core_type = #tpu.core_type<tc>} {
    %c0 = arith.constant 0 : index
    %c0_0 = arith.constant 0 : index
    %0 = vector.load %arg3[%c0, %c0_0] : memref<56x128xf32, #tpu.memory_space<vmem>>, vector<16x128xf32>
    %c16 = arith.constant 16 : index
    %c0_1 = arith.constant 0 : index
    %1 = vector.load %arg3[%c16, %c0_1] : memref<56x128xf32, #tpu.memory_space<vmem>>, vector<1x128xf32>
    %c17 = arith.constant 17 : index
    %c0_2 = arith.constant 0 : index
    %2 = vector.load %arg3[%c17, %c0_2] : memref<56x128xf32, #tpu.memory_space<vmem>>, vector<1x128xf32>
    %c18 = arith.constant 18 : index
    %c0_3 = arith.constant 0 : index
    %3 = vector.load %arg3[%c18, %c0_3] : memref<56x128xf32, #tpu.memory_space<vmem>>, vector<32x128xf32>
    %c50 = arith.constant 50 : index
    %c0_4 = arith.constant 0 : index
    %4 = vector.load %arg3[%c50, %c0_4] : memref<56x128xf32, #tpu.memory_space<vmem>>, vector<1x128xf32>
    %c0_5 = arith.constant 0 : index
    %c0_6 = arith.constant 0 : index
    %5 = vector.load %arg2[%c0_5, %c0_6] : memref<64x256xf32, #tpu.memory_space<vmem>>, vector<64x256xf32>
    %c0_7 = arith.constant 0 : index
    %c0_8 = arith.constant 0 : index
    %6 = vector.load %arg1[%c0_7, %c0_8] : memref<8x128xf32, #tpu.memory_space<vmem>>, vector<8x128xf32>
    %7 = vector.extract_strided_slice %6 {offsets = [0, 0], sizes = [8, 32], strides = [1, 1]} : vector<8x128xf32> to vector<8x32xf32>
    %8 = vector.extract_strided_slice %6 {offsets = [0, 32], sizes = [8, 32], strides = [1, 1]} : vector<8x128xf32> to vector<8x32xf32>
    %9 = vector.extract_strided_slice %6 {offsets = [0, 64], sizes = [8, 32], strides = [1, 1]} : vector<8x128xf32> to vector<8x32xf32>
    %10 = vector.extract_strided_slice %6 {offsets = [0, 96], sizes = [8, 32], strides = [1, 1]} : vector<8x128xf32> to vector<8x32xf32>
    %c0_9 = arith.constant 0 : index
    %c0_10 = arith.constant 0 : index
    %11 = vector.load %arg0[%c0_9, %c0_10] : memref<64x16xf32, #tpu.memory_space<vmem>>, vector<64x16xf32>
    %cst = arith.constant dense<0.000000e+00> : vector<64x128xf32>
    %12 = tpu.matmul %11, %0, %cst {dimension_numbers = #tpu.dot_dimension_numbers<[1], [0], [0], [1], [0, 0, 1, 1], [], []>} : vector<64x16xf32>, vector<16x128xf32>, vector<64x128xf32> -> vector<64x128xf32>
    %13 = vector.broadcast %1 : vector<1x128xf32> to vector<64x128xf32>
    %14 = arith.addf %12, %13 : vector<64x128xf32>
    %15 = tpu.concatenate %7, %8 in 1 : vector<8x32xf32>, vector<8x32xf32> -> vector<8x64xf32>
    %cst_11 = arith.constant dense<0.000000e+00> : vector<8x256xf32>
    %16 = tpu.matmul %15, %5, %cst_11 {dimension_numbers = #tpu.dot_dimension_numbers<[1], [0], [0], [1], [0, 0, 1, 1], [], []>} : vector<8x64xf32>, vector<64x256xf32>, vector<8x256xf32> -> vector<8x256xf32>
    %17 = vector.extract_strided_slice %16 {offsets = [0, 0], sizes = [8, 128], strides = [1, 1]} : vector<8x256xf32> to vector<8x128xf32>
    %18 = vector.extract_strided_slice %14 {offsets = [0, 0], sizes = [8, 128], strides = [1, 1]} : vector<64x128xf32> to vector<8x128xf32>
    %19 = arith.addf %17, %18 : vector<8x128xf32>
    %20 = arith.negf %19 : vector<8x128xf32>
    %21 = math.exp %20 : vector<8x128xf32>
    %cst_12 = arith.constant 1.000000e+00 : f32
    %22 = vector.broadcast %cst_12 : f32 to vector<8x128xf32>
    %23 = arith.addf %22, %21 : vector<8x128xf32>
    %24 = arith.divf %22, %23 : vector<8x128xf32>
    %25 = vector.extract_strided_slice %24 {offsets = [0, 0], sizes = [8, 32], strides = [1, 1]} : vector<8x128xf32> to vector<8x32xf32>
    %26 = vector.extract_strided_slice %24 {offsets = [0, 32], sizes = [8, 32], strides = [1, 1]} : vector<8x128xf32> to vector<8x32xf32>
    %27 = vector.extract_strided_slice %24 {offsets = [0, 64], sizes = [8, 32], strides = [1, 1]} : vector<8x128xf32> to vector<8x32xf32>
    %cst_13 = arith.constant 2.000000e+00 : f32
    %28 = vector.broadcast %cst_13 : f32 to vector<8x32xf32>
    %29 = arith.mulf %28, %27 : vector<8x32xf32>
    %cst_14 = arith.constant 1.000000e+00 : f32
    %30 = vector.broadcast %cst_14 : f32 to vector<8x32xf32>
    %31 = arith.subf %29, %30 : vector<8x32xf32>
    %32 = vector.extract_strided_slice %24 {offsets = [0, 96], sizes = [8, 32], strides = [1, 1]} : vector<8x128xf32> to vector<8x32xf32>
    %33 = arith.mulf %25, %9 : vector<8x32xf32>
    %34 = arith.mulf %26, %31 : vector<8x32xf32>
    %35 = arith.addf %33, %34 : vector<8x32xf32>
    %36 = math.tanh %35 : vector<8x32xf32>
    %37 = arith.mulf %32, %36 : vector<8x32xf32>
    %38 = tpu.concatenate %37, %8 in 1 : vector<8x32xf32>, vector<8x32xf32> -> vector<8x64xf32>
    %cst_15 = arith.constant dense<0.000000e+00> : vector<8x256xf32>
    %39 = tpu.matmul %38, %5, %cst_15 {dimension_numbers = #tpu.dot_dimension_numbers<[1], [0], [0], [1], [0, 0, 1, 1], [], []>} : vector<8x64xf32>, vector<64x256xf32>, vector<8x256xf32> -> vector<8x256xf32>
    %40 = vector.extract_strided_slice %39 {offsets = [0, 0], sizes = [8, 128], strides = [1, 1]} : vector<8x256xf32> to vector<8x128xf32>
    %41 = vector.extract_strided_slice %14 {offsets = [8, 0], sizes = [8, 128], strides = [1, 1]} : vector<64x128xf32> to vector<8x128xf32>
    %42 = arith.addf %40, %41 : vector<8x128xf32>
    %43 = arith.negf %42 : vector<8x128xf32>
    %44 = math.exp %43 : vector<8x128xf32>
    %cst_16 = arith.constant 1.000000e+00 : f32
    %45 = vector.broadcast %cst_16 : f32 to vector<8x128xf32>
    %46 = arith.addf %45, %44 : vector<8x128xf32>
    %47 = arith.divf %45, %46 : vector<8x128xf32>
    %48 = vector.extract_strided_slice %47 {offsets = [0, 0], sizes = [8, 32], strides = [1, 1]} : vector<8x128xf32> to vector<8x32xf32>
    %49 = vector.extract_strided_slice %47 {offsets = [0, 32], sizes = [8, 32], strides = [1, 1]} : vector<8x128xf32> to vector<8x32xf32>
    %50 = vector.extract_strided_slice %47 {offsets = [0, 64], sizes = [8, 32], strides = [1, 1]} : vector<8x128xf32> to vector<8x32xf32>
    %cst_17 = arith.constant 2.000000e+00 : f32
    %51 = vector.broadcast %cst_17 : f32 to vector<8x32xf32>
    %52 = arith.mulf %51, %50 : vector<8x32xf32>
    %cst_18 = arith.constant 1.000000e+00 : f32
    %53 = vector.broadcast %cst_18 : f32 to vector<8x32xf32>
    %54 = arith.subf %52, %53 : vector<8x32xf32>
    %55 = vector.extract_strided_slice %47 {offsets = [0, 96], sizes = [8, 32], strides = [1, 1]} : vector<8x128xf32> to vector<8x32xf32>
    %56 = arith.mulf %48, %35 : vector<8x32xf32>
    %57 = arith.mulf %49, %54 : vector<8x32xf32>
    %58 = arith.addf %56, %57 : vector<8x32xf32>
    %59 = math.tanh %58 : vector<8x32xf32>
    %60 = arith.mulf %55, %59 : vector<8x32xf32>
    %61 = vector.extract_strided_slice %39 {offsets = [0, 128], sizes = [8, 128], strides = [1, 1]} : vector<8x256xf32> to vector<8x128xf32>
    %62 = vector.broadcast %2 : vector<1x128xf32> to vector<8x128xf32>
    %63 = arith.addf %61, %62 : vector<8x128xf32>
    %64 = arith.negf %63 : vector<8x128xf32>
    %65 = math.exp %64 : vector<8x128xf32>
    %cst_19 = arith.constant 1.000000e+00 : f32
    %66 = vector.broadcast %cst_19 : f32 to vector<8x128xf32>
    %67 = arith.addf %66, %65 : vector<8x128xf32>
    %68 = arith.divf %66, %67 : vector<8x128xf32>
    %69 = vector.extract_strided_slice %68 {offsets = [0, 0], sizes = [8, 32], strides = [1, 1]} : vector<8x128xf32> to vector<8x32xf32>
    %70 = vector.extract_strided_slice %68 {offsets = [0, 32], sizes = [8, 32], strides = [1, 1]} : vector<8x128xf32> to vector<8x32xf32>
    %71 = vector.extract_strided_slice %68 {offsets = [0, 64], sizes = [8, 32], strides = [1, 1]} : vector<8x128xf32> to vector<8x32xf32>
    %cst_20 = arith.constant 2.000000e+00 : f32
    %72 = vector.broadcast %cst_20 : f32 to vector<8x32xf32>
    %73 = arith.mulf %72, %71 : vector<8x32xf32>
    %cst_21 = arith.constant 1.000000e+00 : f32
    %74 = vector.broadcast %cst_21 : f32 to vector<8x32xf32>
    %75 = arith.subf %73, %74 : vector<8x32xf32>
    %76 = vector.extract_strided_slice %68 {offsets = [0, 96], sizes = [8, 32], strides = [1, 1]} : vector<8x128xf32> to vector<8x32xf32>
    %77 = arith.mulf %69, %10 : vector<8x32xf32>
    %78 = arith.mulf %70, %75 : vector<8x32xf32>
    %79 = arith.addf %77, %78 : vector<8x32xf32>
    %80 = math.tanh %79 : vector<8x32xf32>
    %81 = arith.mulf %76, %80 : vector<8x32xf32>
    %82 = tpu.concatenate %60, %81 in 1 : vector<8x32xf32>, vector<8x32xf32> -> vector<8x64xf32>
    %cst_22 = arith.constant dense<0.000000e+00> : vector<8x256xf32>
    %83 = tpu.matmul %82, %5, %cst_22 {dimension_numbers = #tpu.dot_dimension_numbers<[1], [0], [0], [1], [0, 0, 1, 1], [], []>} : vector<8x64xf32>, vector<64x256xf32>, vector<8x256xf32> -> vector<8x256xf32>
    %84 = vector.extract_strided_slice %83 {offsets = [0, 0], sizes = [8, 128], strides = [1, 1]} : vector<8x256xf32> to vector<8x128xf32>
    %85 = vector.extract_strided_slice %14 {offsets = [16, 0], sizes = [8, 128], strides = [1, 1]} : vector<64x128xf32> to vector<8x128xf32>
    %86 = arith.addf %84, %85 : vector<8x128xf32>
    %87 = arith.negf %86 : vector<8x128xf32>
    %88 = math.exp %87 : vector<8x128xf32>
    %cst_23 = arith.constant 1.000000e+00 : f32
    %89 = vector.broadcast %cst_23 : f32 to vector<8x128xf32>
    %90 = arith.addf %89, %88 : vector<8x128xf32>
    %91 = arith.divf %89, %90 : vector<8x128xf32>
    %92 = vector.extract_strided_slice %91 {offsets = [0, 0], sizes = [8, 32], strides = [1, 1]} : vector<8x128xf32> to vector<8x32xf32>
    %93 = vector.extract_strided_slice %91 {offsets = [0, 32], sizes = [8, 32], strides = [1, 1]} : vector<8x128xf32> to vector<8x32xf32>
    %94 = vector.extract_strided_slice %91 {offsets = [0, 64], sizes = [8, 32], strides = [1, 1]} : vector<8x128xf32> to vector<8x32xf32>
    %cst_24 = arith.constant 2.000000e+00 : f32
    %95 = vector.broadcast %cst_24 : f32 to vector<8x32xf32>
    %96 = arith.mulf %95, %94 : vector<8x32xf32>
    %cst_25 = arith.constant 1.000000e+00 : f32
    %97 = vector.broadcast %cst_25 : f32 to vector<8x32xf32>
    %98 = arith.subf %96, %97 : vector<8x32xf32>
    %99 = vector.extract_strided_slice %91 {offsets = [0, 96], sizes = [8, 32], strides = [1, 1]} : vector<8x128xf32> to vector<8x32xf32>
    %100 = arith.mulf %92, %58 : vector<8x32xf32>
    %101 = arith.mulf %93, %98 : vector<8x32xf32>
    %102 = arith.addf %100, %101 : vector<8x32xf32>
    %103 = math.tanh %102 : vector<8x32xf32>
    %104 = arith.mulf %99, %103 : vector<8x32xf32>
    %105 = vector.extract_strided_slice %83 {offsets = [0, 128], sizes = [8, 128], strides = [1, 1]} : vector<8x256xf32> to vector<8x128xf32>
    %106 = vector.broadcast %2 : vector<1x128xf32> to vector<8x128xf32>
    %107 = arith.addf %105, %106 : vector<8x128xf32>
    %108 = arith.negf %107 : vector<8x128xf32>
    %109 = math.exp %108 : vector<8x128xf32>
    %cst_26 = arith.constant 1.000000e+00 : f32
    %110 = vector.broadcast %cst_26 : f32 to vector<8x128xf32>
    %111 = arith.addf %110, %109 : vector<8x128xf32>
    %112 = arith.divf %110, %111 : vector<8x128xf32>
    %113 = vector.extract_strided_slice %112 {offsets = [0, 0], sizes = [8, 32], strides = [1, 1]} : vector<8x128xf32> to vector<8x32xf32>
    %114 = vector.extract_strided_slice %112 {offsets = [0, 32], sizes = [8, 32], strides = [1, 1]} : vector<8x128xf32> to vector<8x32xf32>
    %115 = vector.extract_strided_slice %112 {offsets = [0, 64], sizes = [8, 32], strides = [1, 1]} : vector<8x128xf32> to vector<8x32xf32>
    %cst_27 = arith.constant 2.000000e+00 : f32
    %116 = vector.broadcast %cst_27 : f32 to vector<8x32xf32>
    %117 = arith.mulf %116, %115 : vector<8x32xf32>
    %cst_28 = arith.constant 1.000000e+00 : f32
    %118 = vector.broadcast %cst_28 : f32 to vector<8x32xf32>
    %119 = arith.subf %117, %118 : vector<8x32xf32>
    %120 = vector.extract_strided_slice %112 {offsets = [0, 96], sizes = [8, 32], strides = [1, 1]} : vector<8x128xf32> to vector<8x32xf32>
    %121 = arith.mulf %113, %79 : vector<8x32xf32>
    %122 = arith.mulf %114, %119 : vector<8x32xf32>
    %123 = arith.addf %121, %122 : vector<8x32xf32>
    %124 = math.tanh %123 : vector<8x32xf32>
    %125 = arith.mulf %120, %124 : vector<8x32xf32>
    %126 = tpu.concatenate %104, %125 in 1 : vector<8x32xf32>, vector<8x32xf32> -> vector<8x64xf32>
    %cst_29 = arith.constant dense<0.000000e+00> : vector<8x256xf32>
    %127 = tpu.matmul %126, %5, %cst_29 {dimension_numbers = #tpu.dot_dimension_numbers<[1], [0], [0], [1], [0, 0, 1, 1], [], []>} : vector<8x64xf32>, vector<64x256xf32>, vector<8x256xf32> -> vector<8x256xf32>
    %128 = vector.extract_strided_slice %127 {offsets = [0, 0], sizes = [8, 128], strides = [1, 1]} : vector<8x256xf32> to vector<8x128xf32>
    %129 = vector.extract_strided_slice %14 {offsets = [24, 0], sizes = [8, 128], strides = [1, 1]} : vector<64x128xf32> to vector<8x128xf32>
    %130 = arith.addf %128, %129 : vector<8x128xf32>
    %131 = arith.negf %130 : vector<8x128xf32>
    %132 = math.exp %131 : vector<8x128xf32>
    %cst_30 = arith.constant 1.000000e+00 : f32
    %133 = vector.broadcast %cst_30 : f32 to vector<8x128xf32>
    %134 = arith.addf %133, %132 : vector<8x128xf32>
    %135 = arith.divf %133, %134 : vector<8x128xf32>
    %136 = vector.extract_strided_slice %135 {offsets = [0, 0], sizes = [8, 32], strides = [1, 1]} : vector<8x128xf32> to vector<8x32xf32>
    %137 = vector.extract_strided_slice %135 {offsets = [0, 32], sizes = [8, 32], strides = [1, 1]} : vector<8x128xf32> to vector<8x32xf32>
    %138 = vector.extract_strided_slice %135 {offsets = [0, 64], sizes = [8, 32], strides = [1, 1]} : vector<8x128xf32> to vector<8x32xf32>
    %cst_31 = arith.constant 2.000000e+00 : f32
    %139 = vector.broadcast %cst_31 : f32 to vector<8x32xf32>
    %140 = arith.mulf %139, %138 : vector<8x32xf32>
    %cst_32 = arith.constant 1.000000e+00 : f32
    %141 = vector.broadcast %cst_32 : f32 to vector<8x32xf32>
    %142 = arith.subf %140, %141 : vector<8x32xf32>
    %143 = vector.extract_strided_slice %135 {offsets = [0, 96], sizes = [8, 32], strides = [1, 1]} : vector<8x128xf32> to vector<8x32xf32>
    %144 = arith.mulf %136, %102 : vector<8x32xf32>
    %145 = arith.mulf %137, %142 : vector<8x32xf32>
    %146 = arith.addf %144, %145 : vector<8x32xf32>
    %147 = math.tanh %146 : vector<8x32xf32>
    %148 = arith.mulf %143, %147 : vector<8x32xf32>
    %149 = vector.extract_strided_slice %127 {offsets = [0, 128], sizes = [8, 128], strides = [1, 1]} : vector<8x256xf32> to vector<8x128xf32>
    %150 = vector.broadcast %2 : vector<1x128xf32> to vector<8x128xf32>
    %151 = arith.addf %149, %150 : vector<8x128xf32>
    %152 = arith.negf %151 : vector<8x128xf32>
    %153 = math.exp %152 : vector<8x128xf32>
    %cst_33 = arith.constant 1.000000e+00 : f32
    %154 = vector.broadcast %cst_33 : f32 to vector<8x128xf32>
    %155 = arith.addf %154, %153 : vector<8x128xf32>
    %156 = arith.divf %154, %155 : vector<8x128xf32>
    %157 = vector.extract_strided_slice %156 {offsets = [0, 0], sizes = [8, 32], strides = [1, 1]} : vector<8x128xf32> to vector<8x32xf32>
    %158 = vector.extract_strided_slice %156 {offsets = [0, 32], sizes = [8, 32], strides = [1, 1]} : vector<8x128xf32> to vector<8x32xf32>
    %159 = vector.extract_strided_slice %156 {offsets = [0, 64], sizes = [8, 32], strides = [1, 1]} : vector<8x128xf32> to vector<8x32xf32>
    %cst_34 = arith.constant 2.000000e+00 : f32
    %160 = vector.broadcast %cst_34 : f32 to vector<8x32xf32>
    %161 = arith.mulf %160, %159 : vector<8x32xf32>
    %cst_35 = arith.constant 1.000000e+00 : f32
    %162 = vector.broadcast %cst_35 : f32 to vector<8x32xf32>
    %163 = arith.subf %161, %162 : vector<8x32xf32>
    %164 = vector.extract_strided_slice %156 {offsets = [0, 96], sizes = [8, 32], strides = [1, 1]} : vector<8x128xf32> to vector<8x32xf32>
    %165 = arith.mulf %157, %123 : vector<8x32xf32>
    %166 = arith.mulf %158, %163 : vector<8x32xf32>
    %167 = arith.addf %165, %166 : vector<8x32xf32>
    %168 = math.tanh %167 : vector<8x32xf32>
    %169 = arith.mulf %164, %168 : vector<8x32xf32>
    %170 = tpu.concatenate %148, %169 in 1 : vector<8x32xf32>, vector<8x32xf32> -> vector<8x64xf32>
    %cst_36 = arith.constant dense<0.000000e+00> : vector<8x256xf32>
    %171 = tpu.matmul %170, %5, %cst_36 {dimension_numbers = #tpu.dot_dimension_numbers<[1], [0], [0], [1], [0, 0, 1, 1], [], []>} : vector<8x64xf32>, vector<64x256xf32>, vector<8x256xf32> -> vector<8x256xf32>
    %172 = vector.extract_strided_slice %171 {offsets = [0, 0], sizes = [8, 128], strides = [1, 1]} : vector<8x256xf32> to vector<8x128xf32>
    %173 = vector.extract_strided_slice %14 {offsets = [32, 0], sizes = [8, 128], strides = [1, 1]} : vector<64x128xf32> to vector<8x128xf32>
    %174 = arith.addf %172, %173 : vector<8x128xf32>
    %175 = arith.negf %174 : vector<8x128xf32>
    %176 = math.exp %175 : vector<8x128xf32>
    %cst_37 = arith.constant 1.000000e+00 : f32
    %177 = vector.broadcast %cst_37 : f32 to vector<8x128xf32>
    %178 = arith.addf %177, %176 : vector<8x128xf32>
    %179 = arith.divf %177, %178 : vector<8x128xf32>
    %180 = vector.extract_strided_slice %179 {offsets = [0, 0], sizes = [8, 32], strides = [1, 1]} : vector<8x128xf32> to vector<8x32xf32>
    %181 = vector.extract_strided_slice %179 {offsets = [0, 32], sizes = [8, 32], strides = [1, 1]} : vector<8x128xf32> to vector<8x32xf32>
    %182 = vector.extract_strided_slice %179 {offsets = [0, 64], sizes = [8, 32], strides = [1, 1]} : vector<8x128xf32> to vector<8x32xf32>
    %cst_38 = arith.constant 2.000000e+00 : f32
    %183 = vector.broadcast %cst_38 : f32 to vector<8x32xf32>
    %184 = arith.mulf %183, %182 : vector<8x32xf32>
    %cst_39 = arith.constant 1.000000e+00 : f32
    %185 = vector.broadcast %cst_39 : f32 to vector<8x32xf32>
    %186 = arith.subf %184, %185 : vector<8x32xf32>
    %187 = vector.extract_strided_slice %179 {offsets = [0, 96], sizes = [8, 32], strides = [1, 1]} : vector<8x128xf32> to vector<8x32xf32>
    %188 = arith.mulf %180, %146 : vector<8x32xf32>
    %189 = arith.mulf %181, %186 : vector<8x32xf32>
    %190 = arith.addf %188, %189 : vector<8x32xf32>
    %191 = math.tanh %190 : vector<8x32xf32>
    %192 = arith.mulf %187, %191 : vector<8x32xf32>
    %193 = vector.extract_strided_slice %171 {offsets = [0, 128], sizes = [8, 128], strides = [1, 1]} : vector<8x256xf32> to vector<8x128xf32>
    %194 = vector.broadcast %2 : vector<1x128xf32> to vector<8x128xf32>
    %195 = arith.addf %193, %194 : vector<8x128xf32>
    %196 = arith.negf %195 : vector<8x128xf32>
    %197 = math.exp %196 : vector<8x128xf32>
    %cst_40 = arith.constant 1.000000e+00 : f32
    %198 = vector.broadcast %cst_40 : f32 to vector<8x128xf32>
    %199 = arith.addf %198, %197 : vector<8x128xf32>
    %200 = arith.divf %198, %199 : vector<8x128xf32>
    %201 = vector.extract_strided_slice %200 {offsets = [0, 0], sizes = [8, 32], strides = [1, 1]} : vector<8x128xf32> to vector<8x32xf32>
    %202 = vector.extract_strided_slice %200 {offsets = [0, 32], sizes = [8, 32], strides = [1, 1]} : vector<8x128xf32> to vector<8x32xf32>
    %203 = vector.extract_strided_slice %200 {offsets = [0, 64], sizes = [8, 32], strides = [1, 1]} : vector<8x128xf32> to vector<8x32xf32>
    %cst_41 = arith.constant 2.000000e+00 : f32
    %204 = vector.broadcast %cst_41 : f32 to vector<8x32xf32>
    %205 = arith.mulf %204, %203 : vector<8x32xf32>
    %cst_42 = arith.constant 1.000000e+00 : f32
    %206 = vector.broadcast %cst_42 : f32 to vector<8x32xf32>
    %207 = arith.subf %205, %206 : vector<8x32xf32>
    %208 = vector.extract_strided_slice %200 {offsets = [0, 96], sizes = [8, 32], strides = [1, 1]} : vector<8x128xf32> to vector<8x32xf32>
    %209 = arith.mulf %201, %167 : vector<8x32xf32>
    %210 = arith.mulf %202, %207 : vector<8x32xf32>
    %211 = arith.addf %209, %210 : vector<8x32xf32>
    %212 = math.tanh %211 : vector<8x32xf32>
    %213 = arith.mulf %208, %212 : vector<8x32xf32>
    %214 = tpu.concatenate %192, %213 in 1 : vector<8x32xf32>, vector<8x32xf32> -> vector<8x64xf32>
    %cst_43 = arith.constant dense<0.000000e+00> : vector<8x256xf32>
    %215 = tpu.matmul %214, %5, %cst_43 {dimension_numbers = #tpu.dot_dimension_numbers<[1], [0], [0], [1], [0, 0, 1, 1], [], []>} : vector<8x64xf32>, vector<64x256xf32>, vector<8x256xf32> -> vector<8x256xf32>
    %216 = vector.extract_strided_slice %215 {offsets = [0, 0], sizes = [8, 128], strides = [1, 1]} : vector<8x256xf32> to vector<8x128xf32>
    %217 = vector.extract_strided_slice %14 {offsets = [40, 0], sizes = [8, 128], strides = [1, 1]} : vector<64x128xf32> to vector<8x128xf32>
    %218 = arith.addf %216, %217 : vector<8x128xf32>
    %219 = arith.negf %218 : vector<8x128xf32>
    %220 = math.exp %219 : vector<8x128xf32>
    %cst_44 = arith.constant 1.000000e+00 : f32
    %221 = vector.broadcast %cst_44 : f32 to vector<8x128xf32>
    %222 = arith.addf %221, %220 : vector<8x128xf32>
    %223 = arith.divf %221, %222 : vector<8x128xf32>
    %224 = vector.extract_strided_slice %223 {offsets = [0, 0], sizes = [8, 32], strides = [1, 1]} : vector<8x128xf32> to vector<8x32xf32>
    %225 = vector.extract_strided_slice %223 {offsets = [0, 32], sizes = [8, 32], strides = [1, 1]} : vector<8x128xf32> to vector<8x32xf32>
    %226 = vector.extract_strided_slice %223 {offsets = [0, 64], sizes = [8, 32], strides = [1, 1]} : vector<8x128xf32> to vector<8x32xf32>
    %cst_45 = arith.constant 2.000000e+00 : f32
    %227 = vector.broadcast %cst_45 : f32 to vector<8x32xf32>
    %228 = arith.mulf %227, %226 : vector<8x32xf32>
    %cst_46 = arith.constant 1.000000e+00 : f32
    %229 = vector.broadcast %cst_46 : f32 to vector<8x32xf32>
    %230 = arith.subf %228, %229 : vector<8x32xf32>
    %231 = vector.extract_strided_slice %223 {offsets = [0, 96], sizes = [8, 32], strides = [1, 1]} : vector<8x128xf32> to vector<8x32xf32>
    %232 = arith.mulf %224, %190 : vector<8x32xf32>
    %233 = arith.mulf %225, %230 : vector<8x32xf32>
    %234 = arith.addf %232, %233 : vector<8x32xf32>
    %235 = math.tanh %234 : vector<8x32xf32>
    %236 = arith.mulf %231, %235 : vector<8x32xf32>
    %237 = vector.extract_strided_slice %215 {offsets = [0, 128], sizes = [8, 128], strides = [1, 1]} : vector<8x256xf32> to vector<8x128xf32>
    %238 = vector.broadcast %2 : vector<1x128xf32> to vector<8x128xf32>
    %239 = arith.addf %237, %238 : vector<8x128xf32>
    %240 = arith.negf %239 : vector<8x128xf32>
    %241 = math.exp %240 : vector<8x128xf32>
    %cst_47 = arith.constant 1.000000e+00 : f32
    %242 = vector.broadcast %cst_47 : f32 to vector<8x128xf32>
    %243 = arith.addf %242, %241 : vector<8x128xf32>
    %244 = arith.divf %242, %243 : vector<8x128xf32>
    %245 = vector.extract_strided_slice %244 {offsets = [0, 0], sizes = [8, 32], strides = [1, 1]} : vector<8x128xf32> to vector<8x32xf32>
    %246 = vector.extract_strided_slice %244 {offsets = [0, 32], sizes = [8, 32], strides = [1, 1]} : vector<8x128xf32> to vector<8x32xf32>
    %247 = vector.extract_strided_slice %244 {offsets = [0, 64], sizes = [8, 32], strides = [1, 1]} : vector<8x128xf32> to vector<8x32xf32>
    %cst_48 = arith.constant 2.000000e+00 : f32
    %248 = vector.broadcast %cst_48 : f32 to vector<8x32xf32>
    %249 = arith.mulf %248, %247 : vector<8x32xf32>
    %cst_49 = arith.constant 1.000000e+00 : f32
    %250 = vector.broadcast %cst_49 : f32 to vector<8x32xf32>
    %251 = arith.subf %249, %250 : vector<8x32xf32>
    %252 = vector.extract_strided_slice %244 {offsets = [0, 96], sizes = [8, 32], strides = [1, 1]} : vector<8x128xf32> to vector<8x32xf32>
    %253 = arith.mulf %245, %211 : vector<8x32xf32>
    %254 = arith.mulf %246, %251 : vector<8x32xf32>
    %255 = arith.addf %253, %254 : vector<8x32xf32>
    %256 = math.tanh %255 : vector<8x32xf32>
    %257 = arith.mulf %252, %256 : vector<8x32xf32>
    %258 = tpu.concatenate %236, %257 in 1 : vector<8x32xf32>, vector<8x32xf32> -> vector<8x64xf32>
    %cst_50 = arith.constant dense<0.000000e+00> : vector<8x256xf32>
    %259 = tpu.matmul %258, %5, %cst_50 {dimension_numbers = #tpu.dot_dimension_numbers<[1], [0], [0], [1], [0, 0, 1, 1], [], []>} : vector<8x64xf32>, vector<64x256xf32>, vector<8x256xf32> -> vector<8x256xf32>
    %260 = vector.extract_strided_slice %259 {offsets = [0, 0], sizes = [8, 128], strides = [1, 1]} : vector<8x256xf32> to vector<8x128xf32>
    %261 = vector.extract_strided_slice %14 {offsets = [48, 0], sizes = [8, 128], strides = [1, 1]} : vector<64x128xf32> to vector<8x128xf32>
    %262 = arith.addf %260, %261 : vector<8x128xf32>
    %263 = arith.negf %262 : vector<8x128xf32>
    %264 = math.exp %263 : vector<8x128xf32>
    %cst_51 = arith.constant 1.000000e+00 : f32
    %265 = vector.broadcast %cst_51 : f32 to vector<8x128xf32>
    %266 = arith.addf %265, %264 : vector<8x128xf32>
    %267 = arith.divf %265, %266 : vector<8x128xf32>
    %268 = vector.extract_strided_slice %267 {offsets = [0, 0], sizes = [8, 32], strides = [1, 1]} : vector<8x128xf32> to vector<8x32xf32>
    %269 = vector.extract_strided_slice %267 {offsets = [0, 32], sizes = [8, 32], strides = [1, 1]} : vector<8x128xf32> to vector<8x32xf32>
    %270 = vector.extract_strided_slice %267 {offsets = [0, 64], sizes = [8, 32], strides = [1, 1]} : vector<8x128xf32> to vector<8x32xf32>
    %cst_52 = arith.constant 2.000000e+00 : f32
    %271 = vector.broadcast %cst_52 : f32 to vector<8x32xf32>
    %272 = arith.mulf %271, %270 : vector<8x32xf32>
    %cst_53 = arith.constant 1.000000e+00 : f32
    %273 = vector.broadcast %cst_53 : f32 to vector<8x32xf32>
    %274 = arith.subf %272, %273 : vector<8x32xf32>
    %275 = vector.extract_strided_slice %267 {offsets = [0, 96], sizes = [8, 32], strides = [1, 1]} : vector<8x128xf32> to vector<8x32xf32>
    %276 = arith.mulf %268, %234 : vector<8x32xf32>
    %277 = arith.mulf %269, %274 : vector<8x32xf32>
    %278 = arith.addf %276, %277 : vector<8x32xf32>
    %279 = math.tanh %278 : vector<8x32xf32>
    %280 = arith.mulf %275, %279 : vector<8x32xf32>
    %281 = vector.extract_strided_slice %259 {offsets = [0, 128], sizes = [8, 128], strides = [1, 1]} : vector<8x256xf32> to vector<8x128xf32>
    %282 = vector.broadcast %2 : vector<1x128xf32> to vector<8x128xf32>
    %283 = arith.addf %281, %282 : vector<8x128xf32>
    %284 = arith.negf %283 : vector<8x128xf32>
    %285 = math.exp %284 : vector<8x128xf32>
    %cst_54 = arith.constant 1.000000e+00 : f32
    %286 = vector.broadcast %cst_54 : f32 to vector<8x128xf32>
    %287 = arith.addf %286, %285 : vector<8x128xf32>
    %288 = arith.divf %286, %287 : vector<8x128xf32>
    %289 = vector.extract_strided_slice %288 {offsets = [0, 0], sizes = [8, 32], strides = [1, 1]} : vector<8x128xf32> to vector<8x32xf32>
    %290 = vector.extract_strided_slice %288 {offsets = [0, 32], sizes = [8, 32], strides = [1, 1]} : vector<8x128xf32> to vector<8x32xf32>
    %291 = vector.extract_strided_slice %288 {offsets = [0, 64], sizes = [8, 32], strides = [1, 1]} : vector<8x128xf32> to vector<8x32xf32>
    %cst_55 = arith.constant 2.000000e+00 : f32
    %292 = vector.broadcast %cst_55 : f32 to vector<8x32xf32>
    %293 = arith.mulf %292, %291 : vector<8x32xf32>
    %cst_56 = arith.constant 1.000000e+00 : f32
    %294 = vector.broadcast %cst_56 : f32 to vector<8x32xf32>
    %295 = arith.subf %293, %294 : vector<8x32xf32>
    %296 = vector.extract_strided_slice %288 {offsets = [0, 96], sizes = [8, 32], strides = [1, 1]} : vector<8x128xf32> to vector<8x32xf32>
    %297 = arith.mulf %289, %255 : vector<8x32xf32>
    %298 = arith.mulf %290, %295 : vector<8x32xf32>
    %299 = arith.addf %297, %298 : vector<8x32xf32>
    %300 = math.tanh %299 : vector<8x32xf32>
    %301 = arith.mulf %296, %300 : vector<8x32xf32>
    %302 = tpu.concatenate %280, %301 in 1 : vector<8x32xf32>, vector<8x32xf32> -> vector<8x64xf32>
    %cst_57 = arith.constant dense<0.000000e+00> : vector<8x256xf32>
    %303 = tpu.matmul %302, %5, %cst_57 {dimension_numbers = #tpu.dot_dimension_numbers<[1], [0], [0], [1], [0, 0, 1, 1], [], []>} : vector<8x64xf32>, vector<64x256xf32>, vector<8x256xf32> -> vector<8x256xf32>
    %304 = vector.extract_strided_slice %303 {offsets = [0, 0], sizes = [8, 128], strides = [1, 1]} : vector<8x256xf32> to vector<8x128xf32>
    %305 = vector.extract_strided_slice %14 {offsets = [56, 0], sizes = [8, 128], strides = [1, 1]} : vector<64x128xf32> to vector<8x128xf32>
    %306 = arith.addf %304, %305 : vector<8x128xf32>
    %307 = arith.negf %306 : vector<8x128xf32>
    %308 = math.exp %307 : vector<8x128xf32>
    %cst_58 = arith.constant 1.000000e+00 : f32
    %309 = vector.broadcast %cst_58 : f32 to vector<8x128xf32>
    %310 = arith.addf %309, %308 : vector<8x128xf32>
    %311 = arith.divf %309, %310 : vector<8x128xf32>
    %312 = vector.extract_strided_slice %311 {offsets = [0, 0], sizes = [8, 32], strides = [1, 1]} : vector<8x128xf32> to vector<8x32xf32>
    %313 = vector.extract_strided_slice %311 {offsets = [0, 32], sizes = [8, 32], strides = [1, 1]} : vector<8x128xf32> to vector<8x32xf32>
    %314 = vector.extract_strided_slice %311 {offsets = [0, 64], sizes = [8, 32], strides = [1, 1]} : vector<8x128xf32> to vector<8x32xf32>
    %cst_59 = arith.constant 2.000000e+00 : f32
    %315 = vector.broadcast %cst_59 : f32 to vector<8x32xf32>
    %316 = arith.mulf %315, %314 : vector<8x32xf32>
    %cst_60 = arith.constant 1.000000e+00 : f32
    %317 = vector.broadcast %cst_60 : f32 to vector<8x32xf32>
    %318 = arith.subf %316, %317 : vector<8x32xf32>
    %319 = vector.extract_strided_slice %311 {offsets = [0, 96], sizes = [8, 32], strides = [1, 1]} : vector<8x128xf32> to vector<8x32xf32>
    %320 = arith.mulf %312, %278 : vector<8x32xf32>
    %321 = arith.mulf %313, %318 : vector<8x32xf32>
    %322 = arith.addf %320, %321 : vector<8x32xf32>
    %323 = math.tanh %322 : vector<8x32xf32>
    %324 = arith.mulf %319, %323 : vector<8x32xf32>
    %325 = vector.extract_strided_slice %303 {offsets = [0, 128], sizes = [8, 128], strides = [1, 1]} : vector<8x256xf32> to vector<8x128xf32>
    %326 = vector.broadcast %2 : vector<1x128xf32> to vector<8x128xf32>
    %327 = arith.addf %325, %326 : vector<8x128xf32>
    %328 = arith.negf %327 : vector<8x128xf32>
    %329 = math.exp %328 : vector<8x128xf32>
    %cst_61 = arith.constant 1.000000e+00 : f32
    %330 = vector.broadcast %cst_61 : f32 to vector<8x128xf32>
    %331 = arith.addf %330, %329 : vector<8x128xf32>
    %332 = arith.divf %330, %331 : vector<8x128xf32>
    %333 = vector.extract_strided_slice %332 {offsets = [0, 0], sizes = [8, 32], strides = [1, 1]} : vector<8x128xf32> to vector<8x32xf32>
    %334 = vector.extract_strided_slice %332 {offsets = [0, 32], sizes = [8, 32], strides = [1, 1]} : vector<8x128xf32> to vector<8x32xf32>
    %335 = vector.extract_strided_slice %332 {offsets = [0, 64], sizes = [8, 32], strides = [1, 1]} : vector<8x128xf32> to vector<8x32xf32>
    %cst_62 = arith.constant 2.000000e+00 : f32
    %336 = vector.broadcast %cst_62 : f32 to vector<8x32xf32>
    %337 = arith.mulf %336, %335 : vector<8x32xf32>
    %cst_63 = arith.constant 1.000000e+00 : f32
    %338 = vector.broadcast %cst_63 : f32 to vector<8x32xf32>
    %339 = arith.subf %337, %338 : vector<8x32xf32>
    %340 = vector.extract_strided_slice %332 {offsets = [0, 96], sizes = [8, 32], strides = [1, 1]} : vector<8x128xf32> to vector<8x32xf32>
    %341 = arith.mulf %333, %299 : vector<8x32xf32>
    %342 = arith.mulf %334, %339 : vector<8x32xf32>
    %343 = arith.addf %341, %342 : vector<8x32xf32>
    %344 = math.tanh %343 : vector<8x32xf32>
    %345 = arith.mulf %340, %344 : vector<8x32xf32>
    %346 = tpu.concatenate %324, %345 in 1 : vector<8x32xf32>, vector<8x32xf32> -> vector<8x64xf32>
    %cst_64 = arith.constant dense<0.000000e+00> : vector<8x256xf32>
    %347 = tpu.matmul %346, %5, %cst_64 {dimension_numbers = #tpu.dot_dimension_numbers<[1], [0], [0], [1], [0, 0, 1, 1], [], []>} : vector<8x64xf32>, vector<64x256xf32>, vector<8x256xf32> -> vector<8x256xf32>
    %348 = vector.extract_strided_slice %347 {offsets = [0, 128], sizes = [8, 128], strides = [1, 1]} : vector<8x256xf32> to vector<8x128xf32>
    %349 = vector.broadcast %2 : vector<1x128xf32> to vector<8x128xf32>
    %350 = arith.addf %348, %349 : vector<8x128xf32>
    %351 = arith.negf %350 : vector<8x128xf32>
    %352 = math.exp %351 : vector<8x128xf32>
    %cst_65 = arith.constant 1.000000e+00 : f32
    %353 = vector.broadcast %cst_65 : f32 to vector<8x128xf32>
    %354 = arith.addf %353, %352 : vector<8x128xf32>
    %355 = arith.divf %353, %354 : vector<8x128xf32>
    %356 = vector.extract_strided_slice %355 {offsets = [0, 0], sizes = [8, 32], strides = [1, 1]} : vector<8x128xf32> to vector<8x32xf32>
    %357 = vector.extract_strided_slice %355 {offsets = [0, 32], sizes = [8, 32], strides = [1, 1]} : vector<8x128xf32> to vector<8x32xf32>
    %358 = vector.extract_strided_slice %355 {offsets = [0, 64], sizes = [8, 32], strides = [1, 1]} : vector<8x128xf32> to vector<8x32xf32>
    %cst_66 = arith.constant 2.000000e+00 : f32
    %359 = vector.broadcast %cst_66 : f32 to vector<8x32xf32>
    %360 = arith.mulf %359, %358 : vector<8x32xf32>
    %cst_67 = arith.constant 1.000000e+00 : f32
    %361 = vector.broadcast %cst_67 : f32 to vector<8x32xf32>
    %362 = arith.subf %360, %361 : vector<8x32xf32>
    %363 = vector.extract_strided_slice %355 {offsets = [0, 96], sizes = [8, 32], strides = [1, 1]} : vector<8x128xf32> to vector<8x32xf32>
    %364 = arith.mulf %356, %343 : vector<8x32xf32>
    %365 = arith.mulf %357, %362 : vector<8x32xf32>
    %366 = arith.addf %364, %365 : vector<8x32xf32>
    %367 = math.tanh %366 : vector<8x32xf32>
    %368 = arith.mulf %363, %367 : vector<8x32xf32>
    %369 = tpu.concatenate %324, %368, %322, %366 in 1 : vector<8x32xf32>, vector<8x32xf32>, vector<8x32xf32>, vector<8x32xf32> -> vector<8x128xf32>
    %c0_68 = arith.constant 0 : index
    %c0_69 = arith.constant 0 : index
    %370 = vector.load %arg4[%c0_68, %c0_69] : memref<16x128xf32, #tpu.memory_space<vmem>>, vector<8x128xf32>
    tpu.vector_store %arg4[%c0_68, %c0_69], %369 {strides = array<i32>} : memref<16x128xf32, #tpu.memory_space<vmem>>, vector<8x128xf32>,
    %cst_70 = arith.constant 0.000000e+00 : f32
    %371 = vector.broadcast %cst_70 : f32 to vector<8x32xf32>
    %372 = arith.maximumf %368, %371 : vector<8x32xf32>
    %cst_71 = arith.constant dense<0.000000e+00> : vector<8x128xf32>
    %373 = tpu.matmul %372, %3, %cst_71 {dimension_numbers = #tpu.dot_dimension_numbers<[1], [0], [0], [1], [0, 0, 1, 1], [], []>} : vector<8x32xf32>, vector<32x128xf32>, vector<8x128xf32> -> vector<8x128xf32>
    %374 = vector.broadcast %4 : vector<1x128xf32> to vector<8x128xf32>
    %375 = arith.addf %373, %374 : vector<8x128xf32>
    %c8 = arith.constant 8 : index
    %c0_72 = arith.constant 0 : index
    %376 = vector.load %arg4[%c8, %c0_72] : memref<16x128xf32, #tpu.memory_space<vmem>>, vector<8x128xf32>
    tpu.vector_store %arg4[%c8, %c0_72], %375 {strides = array<i32>} : memref<16x128xf32, #tpu.memory_space<vmem>>, vector<8x128xf32>,
    return
  }
}

</mosaic_0001>

<bundles_post_ra>
// kernel: lstm_net_forward.1
= control target key start
LH: loop header
LB: loop body
LE: loop exit
PB: predicated region body
PF: predicated region fallthrough
CT: control target
= control target key end

     0   :  { %9 = vsyncpa [#allocation3], 0  ;;  %s1422_s18 = smov [#allocation2]   ;;  %s1423_s20 = smov 128   ;;  %s1886_s0 = inlined_call_operand.vmem [shape: f32[64,16], index: 0, kind: input, shape index: {}]   ;;  %s1887_s1 = inlined_call_operand.vmem [shape: f32[8,128], index: 1, kind: input, shape index: {}]   ;;  %s1888_s2 = inlined_call_operand.vmem [shape: f32[64,256], index: 2, kind: input, shape index: {}]   ;;  %s1889_s3 = inlined_call_operand.hbm [shape: f32[56,128], index: 3, kind: input, shape index: {}]   ;;  %s1890_s4 = inlined_call_operand.vmem [shape: f32[16,128], index: 4, kind: output, shape index: {}]  }
   0x1   :  { %s20_s17 = sshll.u32 %s1889_s3, 4  ;;  %s22_s19 = sshll.u32 %s1422_s18, 4  ;;  %s21_s17 = int_to_ptr.hbm [resolvable:$true] %s20_s17  ;;  %s23_s19 = int_to_ptr.vmem [resolvable:$true] %s22_s19 }
   0x2   :  { %s1424_s21 = smov 8  }
   0x3   :  { %28 = dma.hbm_to_vmem [thread:$0]  %s21_s17, 896, %s23_s19, [#allocation3], %s1423_s20, %s1423_s20, %s1424_s21  }
   0x4   :  { %1420 = dma.done.wait [#allocation3], 896  }
   0x5   :  { %1421 = vsyncadd [#allocation3], 4294966400  ;;  %v1459_v0 = vld [vmem:[%s1888_s2 + $0x70] sm:$0xff]  ;;  %v1464_v1 = vld [vmem:[%s1888_s2 + $0x60] sm:$0xff]  ;;  %vm68_vm0 = vcmask 130048   ;;  %vm134_vm1 = vcmask 523264  }
   0x6   :  { %146 = vmatpush.msra.mxu1 %v1459_v0  ;;  %v34_v2 = vld [vmem:[#allocation2 + $0x8] sm:$0xff]  ;;  %217 = vmatpush.msra.mxu2 %v1459_v0  ;;  %v1471_v3 = vld [vmem:[%s1888_s2 + $0x50] sm:$0xff]  ;;  %v33_v4 = vld [vmem:[#allocation2] sm:$0xff]  ;;  %s1426_s15 = smov 64   ;;  %s1427_s16 = smov 32   ;;  %vm204_vm6 = vcmask 261120  }
   0x7   :  { %107 = vmatpush.msra.mxu0 %v34_v2  ;;  %v59_v5 = vld [vmem:[%s1886_s0] sm:$0xff]  ;;  %v1488_v7 = vld [vmem:[%s1888_s2 + $0x30] sm:$0xff]  ;;  %v1547_v39 = vld [vmem:[%s1888_s2 + $0x78] sm:$0xff] }
   0x8   :  { %147 = vmatpush.msra.mxu1 %v1464_v1  ;;  %218 = vmatpush.msra.mxu2 %v1464_v1  ;;  %v1481_v6 = vld [vmem:[%s1888_s2 + $0x40] sm:$0xff]  ;;  %v1502_v9 = vld [vmem:[%s1888_s2 + $0x10] sm:$0xff]  ;;  %v1552_v40 = vld [vmem:[%s1888_s2 + $0x68] sm:$0xff] }
   0x9   :  { %108 = vmatpush.msra.mxu0 %v33_v4  ;;  %v1495_v8 = vld [vmem:[%s1888_s2 + $0x20] sm:$0xff]  ;;  %v1531_v12 = vld [vmem:[#allocation2 + $0x10] ss:$0 sm:$0xff]  ;;  %237 = vmatpush.msra.mxu3 %v1547_v39  ;;  %v1559_v41 = vld [vmem:[%s1888_s2 + $0x58] sm:$0xff] }
   0xa   :  { %148 = vmatpush.msra.mxu1 %v1471_v3  ;;  %1232 = vmatmul.msk.f32.vlgmr.msra.gmra.mxu0 %vm68_vm0, %v59_v5  ;;  %v1509_v10 = vld [vmem:[%s1888_s2] sm:$0xff]  ;;  %v1568_v42 = vld [vmem:[%s1888_s2 + $0x48] sm:$0xff]  ;;  %v1577_v43 = vld [vmem:[%s1888_s2 + $0x38] sm:$0xff] }
   0xb   :  { %219 = vmatpush.msra.mxu2 %v1471_v3  ;;  %v1516_v11 = vld [vmem:[%s1887_s1] sm:$0xff]  ;;  %s1425_s1 = smov 96   ;;  %891 = vmatpush.msrb.mxu0 %v1547_v39  ;;  %v1586_v44 = vld [vmem:[%s1888_s2 + $0x28] sm:$0xff]  ;;  %v1595_v45 = vld [vmem:[%s1888_s2 + $0x18] sm:$0xff] }
   0xc   :  { %149 = vmatpush.msra.mxu1 %v1481_v6  ;;  %238 = vmatpush.msra.mxu3 %v1552_v40  ;;  %v1611_v48 = vld [vmem:[%s1888_s2 + $0x8] sm:$0xff]  ;;  %v1650_v54 = vld [vmem:[#allocation2 + $0x11] ss:$0 sm:$0xff] }
   0xd   :  { %220 = vmatpush.msra.mxu2 %v1481_v6  ;;  %892 = vmatpush.msrb.mxu0 %v1552_v40  ;;  %v60_v49 = vld [vmem:[%s1886_s0 + $0x8] sm:$0xff] }
   0xe   :  { %150 = vmatpush.msra.mxu1 %v1488_v7  ;;  %239 = vmatpush.msra.mxu3 %v1559_v41 }
   0xf   :  { %221 = vmatpush.msra.mxu2 %v1488_v7  ;;  %893 = vmatpush.msrb.mxu0 %v1559_v41 }
  0x10   :  { %151 = vmatpush.msra.mxu1 %v1495_v8  ;;  %240 = vmatpush.msra.mxu3 %v1568_v42 }
  0x11   :  { %222 = vmatpush.msra.mxu2 %v1495_v8  ;;  %894 = vmatpush.msrb.mxu0 %v1568_v42 }
  0x12   :  { %152 = vmatpush.msra.mxu1 %v1502_v9  ;;  %241 = vmatpush.msra.mxu3 %v1577_v43 }
  0x13   :  { %223 = vmatpush.msra.mxu2 %v1502_v9  ;;  %895 = vmatpush.msrb.mxu0 %v1577_v43 }
  0x14   :  { %153 = vmatpush.msra.mxu1 %v1509_v10  ;;  %242 = vmatpush.msra.mxu3 %v1586_v44 }
  0x15   :  { %1240 = vmatmul.msk.f32.vlgmr.msra.gmra.mxu1 %vm134_vm1, %v1516_v11  ;;  %224 = vmatpush.msra.mxu2 %v1509_v10 }
  0x16   :  { %351 = vmatpush.msrb.mxu1 %v1459_v0  ;;  %896 = vmatpush.msrb.mxu0 %v1586_v44 }
  0x17   :  { %371 = vmatpush.msrb.mxu2 %v1547_v39  ;;  %243 = vmatpush.msra.mxu3 %v1595_v45 }
  0x18   :  { %352 = vmatpush.msrb.mxu1 %v1464_v1  ;;  %897 = vmatpush.msrb.mxu0 %v1595_v45 }
  0x19   :  { %372 = vmatpush.msrb.mxu2 %v1552_v40  ;;  %244 = vmatpush.msra.mxu3 %v1611_v48 }
  0x1a   :  { %353 = vmatpush.msrb.mxu1 %v1471_v3  ;;  %1233 = vmatmul.msk.f32.gmra.mxu0 %vm68_vm0, %v60_v49 }
  0x1b   :  { %373 = vmatpush.msrb.mxu2 %v1559_v41  ;;  %481 = vmatpush.msrb.mxu3 %v1459_v0 }
  0x1c   :  { %354 = vmatpush.msrb.mxu1 %v1481_v6  ;;  %898 = vmatpush.msrb.mxu0 %v1611_v48 }
  0x1d   :  { %374 = vmatpush.msrb.mxu2 %v1568_v42  ;;  %482 = vmatpush.msrb.mxu3 %v1464_v1 }
  0x1e   :  { %355 = vmatpush.msrb.mxu1 %v1488_v7 }
  0x1f   :  { %375 = vmatpush.msrb.mxu2 %v1577_v43  ;;  %483 = vmatpush.msrb.mxu3 %v1471_v3 }
  0x20   :  { %356 = vmatpush.msrb.mxu1 %v1495_v8 }
  0x21   :  { %376 = vmatpush.msrb.mxu2 %v1586_v44  ;;  %484 = vmatpush.msrb.mxu3 %v1481_v6 }
  0x22   :  { %357 = vmatpush.msrb.mxu1 %v1502_v9 }
  0x23   :  { %377 = vmatpush.msrb.mxu2 %v1595_v45  ;;  %485 = vmatpush.msrb.mxu3 %v1488_v7 }
  0x24   :  { %358 = vmatpush.msrb.mxu1 %v1509_v10 }
  0x25   :  { %378 = vmatpush.msrb.mxu2 %v1611_v48  ;;  %486 = vmatpush.msrb.mxu3 %v1495_v8 }
  0x26   :  { %501 = vmatpush.msra.mxu1 %v1547_v39 }
  0x27   :  { %487 = vmatpush.msrb.mxu3 %v1502_v9 }
  0x28   :  { %502 = vmatpush.msra.mxu1 %v1552_v40 }
  0x29   :  { %488 = vmatpush.msrb.mxu3 %v1509_v10 }
  0x2a   :  { %503 = vmatpush.msra.mxu1 %v1559_v41 }
  0x2c   :  { %504 = vmatpush.msra.mxu1 %v1568_v42 }
  0x2e   :  { %505 = vmatpush.msra.mxu1 %v1577_v43 }
  0x30   :  { %506 = vmatpush.msra.mxu1 %v1586_v44 }
  0x32   :  { %507 = vmatpush.msra.mxu1 %v1595_v45 }
  0x34   :  { %508 = vmatpush.msra.mxu1 %v1611_v48 }
  0x87   :  { %v110_v13 = vpop.f32.mrf.mxu0 }
  0x88   :  { %v111_v14 = vadd.f32 %v1531_v12, %v110_v13 }
  0x92   :  { %v155_v15 = vpop.f32.mrf.mxu1 }
  0x93   :  { %v158_v16 = vadd.f32 %v155_v15, %v111_v14 }
  0x95   :  { %v1241_v17 = vmul.f32 -1.442695, %v158_v16 }
  0x97   :  { %1298 = vpow2.f32 %v1241_v17  ;;  %v113_v52 = vpop.f32.mrf.mxu0 }
  0x98   :  { %v114_v53 = vadd.f32 %v1531_v12, %v113_v52 }
  0x9d   :  { %v1299_v18 = vpop.eup %1298 }
  0x9e   :  { %v162_v19 = vadd.f32 1.0, %v1299_v18 }
  0xa0   :  { %1300 = vrcp.f32 %v162_v19  ;;  %v174_v23 = vand.u32 2147483648, %v162_v19  ;;  %v172_v25 = vand.u32 2147483647, %v162_v19  ;;  %vm168_vm3 = vweird.f32 %v162_v19 }
  0xa2   :  { %v175_v27 = vor.u32 1.1754944e-38, %v174_v23  ;;  %vm173_vm5 = vcmp.eq.f32.partialorder %v172_v25, 8.507059e+37 }
  0xa6   :  { %v1301_v20 = vpop.eup %1300 }
  0xa7   :  { %v164_v21 = vmul.f32 %v1301_v20, %v162_v19  ;;  %vm169_vm2 = vweird.f32 %v1301_v20 }
  0xa8   :  { %vm170_vm4 = vmor %vm168_vm3, %vm169_vm2 }
  0xa9   :  { %v165_v22 = vsub.f32 1.0, %v164_v21 }
  0xab   :  { %v166_v24 = vmul.f32 %v1301_v20, %v165_v22 }
  0xad   :  { %v167_v26 = vadd.f32 %v1301_v20, %v166_v24 }
  0xaf   :  { %v171_v28 = vsel %vm170_vm4, %v1301_v20, %v167_v26 }
  0xb0   :  { %v176_v29 = vsel %vm173_vm5, %v175_v27, %v171_v28 }
  0xb1   :  { %v178_v30 = vmul.f32 2.0, %v176_v29 }
  0xb3   :  { %v1242_v31 = vadd.f32 -1.0, %v178_v30 }
  0xb5   :  { %185 = vrot.lane.b32.xlu0 %v1242_v31, %s1425_s1 }
  0xbd   :  { %180 = vrot.lane.b32.xlu0 %v1516_v11, %s1426_s15 }
 0x127   :  { %v186_v32 = vpop.permute.xlu0 %185 }
 0x128   :  { %v188_v33 = vmul.f32 %v186_v32, %v176_v29 }
 0x12a   :  { %190 = vrot.lane.b32.xlu1 %v188_v33, %s1425_s1 }
 0x12f   :  { %v181_v34 = vpop.permute.xlu0 %180 }
 0x130   :  { %v183_v35 = vmul.f32 %v181_v34, %v176_v29 }
 0x19c   :  { %v191_v36 = vpop.permute.xlu1 %190 }
 0x19d   :  { %v1538_v37 = vadd.f32 %v191_v36, %v183_v35 }
 0x19f   :  { %1302 = vtanh.f32 %v1538_v37 }
 0x1a5   :  { %v1303_v38 = vpop.eup %1302 }
 0x1a6   :  { %196 = vrot.lane.b32.xlu1 %v1303_v38, %s1425_s1 }
 0x1ae   :  { %311 = vrot.lane.b32.xlu1 %v1516_v11, %s1427_s16 }
 0x218   :  { %v197_v46 = vpop.permute.xlu1 %196 }
 0x219   :  { %v199_v47 = vmul.f32 %v197_v46, %v176_v29 }
 0x21b   :  { %201 = vrot.lane.b32.xlu2 %v199_v47, %s1427_s16 }
 0x275   :  { %v202_v50 = vpop.permute.xlu2 %201 }
 0x276   :  { %v205_v51 = vsel %vm204_vm6, %v202_v50, %v1516_v11 }
 0x277   :  { %1243 = vmatmul.msk.f32.vlgmr.msra.gmra.mxu2 %vm134_vm1, %v205_v51  ;;  %1244 = vmatmul.msk.f32.vlgmr.msra.gmra.mxu3 %vm134_vm1, %v205_v51  ;;  %v312_v51 = vpop.permute.xlu1 %311 }
 0x278   :  { %611 = vmatpush.msra.mxu2 %v1459_v0  ;;  %631 = vmatpush.msra.mxu3 %v1547_v39 }
 0x27a   :  { %612 = vmatpush.msra.mxu2 %v1464_v1  ;;  %632 = vmatpush.msra.mxu3 %v1552_v40 }
 0x27c   :  { %613 = vmatpush.msra.mxu2 %v1471_v3  ;;  %633 = vmatpush.msra.mxu3 %v1559_v41 }
 0x27e   :  { %614 = vmatpush.msra.mxu2 %v1481_v6  ;;  %634 = vmatpush.msra.mxu3 %v1568_v42 }
 0x280   :  { %615 = vmatpush.msra.mxu2 %v1488_v7  ;;  %635 = vmatpush.msra.mxu3 %v1577_v43 }
 0x282   :  { %616 = vmatpush.msra.mxu2 %v1495_v8  ;;  %636 = vmatpush.msra.mxu3 %v1586_v44 }
 0x284   :  { %617 = vmatpush.msra.mxu2 %v1502_v9  ;;  %637 = vmatpush.msra.mxu3 %v1595_v45 }
 0x286   :  { %618 = vmatpush.msra.mxu2 %v1509_v10  ;;  %638 = vmatpush.msra.mxu3 %v1611_v48 }
 0x2fa   :  { %v226_v55 = vpop.f32.mrf.mxu2  ;;  %v246_v56 = vpop.f32.mrf.mxu3 }
 0x2fb   :  { %v249_v57 = vadd.f32 %v226_v55, %v114_v53  ;;  %v289_v58 = vadd.f32 %v1650_v54, %v246_v56 }
 0x2fd   :  { %v1245_v59 = vmul.f32 -1.442695, %v249_v57  ;;  %v1247_v60 = vmul.f32 -1.442695, %v289_v58 }
 0x2ff   :  { %1304 = vpow2.f32 %v1245_v59 }
 0x300   :  { %1306 = vpow2.f32 %v1247_v60  ;;  %v61_v60 = vld [vmem:[%s1886_s0 + $0x10] sm:$0xff] }
 0x301   :  { %1234 = vmatmul.msk.f32.gmra.mxu0 %vm68_vm0, %v61_v60 }
 0x305   :  { %v1305_v61 = vpop.eup %1304 }
 0x306   :  { %v1307_v62 = vpop.eup %1306  ;;  %v253_v63 = vadd.f32 1.0, %v1305_v61 }
 0x307   :  { %v293_v2 = vadd.f32 1.0, %v1307_v62 }
 0x308   :  { %1308 = vrcp.f32 %v253_v63  ;;  %v265_v16 = vand.u32 2147483648, %v253_v63  ;;  %v263_v19 = vand.u32 2147483647, %v253_v63  ;;  %vm259_vm9 = vweird.f32 %v253_v63 }
 0x309   :  { %1310 = vrcp.f32 %v293_v2  ;;  %v305_v17 = vand.u32 2147483648, %v293_v2  ;;  %v303_v21 = vand.u32 2147483647, %v293_v2  ;;  %vm299_vm10 = vweird.f32 %v293_v2 }
 0x30a   :  { %v266_v24 = vor.u32 1.1754944e-38, %v265_v16  ;;  %vm264_vm13 = vcmp.eq.f32.partialorder %v263_v19, 8.507059e+37 }
 0x30b   :  { %v306_v25 = vor.u32 1.1754944e-38, %v305_v17  ;;  %vm304_vm14 = vcmp.eq.f32.partialorder %v303_v21, 8.507059e+37 }
 0x30e   :  { %v1309_v4 = vpop.eup %1308 }
 0x30f   :  { %v1311_v5 = vpop.eup %1310  ;;  %v255_v11 = vmul.f32 %v1309_v4, %v253_v63  ;;  %vm260_vm7 = vweird.f32 %v1309_v4 }
 0x310   :  { %v295_v13 = vmul.f32 %v1311_v5, %v293_v2  ;;  %vm300_vm8 = vweird.f32 %v1311_v5  ;;  %vm261_vm11 = vmor %vm259_vm9, %vm260_vm7 }
 0x311   :  { %v256_v14 = vsub.f32 1.0, %v255_v11  ;;  %vm301_vm12 = vmor %vm299_vm10, %vm300_vm8 }
 0x312   :  { %v296_v15 = vsub.f32 1.0, %v295_v13 }
 0x313   :  { %v257_v18 = vmul.f32 %v1309_v4, %v256_v14 }
 0x314   :  { %v297_v20 = vmul.f32 %v1311_v5, %v296_v15 }
 0x315   :  { %v258_v22 = vadd.f32 %v1309_v4, %v257_v18 }
 0x316   :  { %v298_v23 = vadd.f32 %v1311_v5, %v297_v20 }
 0x317   :  { %v262_v26 = vsel %vm261_vm11, %v1309_v4, %v258_v22 }
 0x318   :  { %v302_v27 = vsel %vm301_vm12, %v1311_v5, %v298_v23  ;;  %v267_v28 = vsel %vm264_vm13, %v266_v24, %v262_v26 }
 0x319   :  { %v307_v29 = vsel %vm304_vm14, %v306_v25, %v302_v27  ;;  %v269_v30 = vmul.f32 2.0, %v267_v28  ;;  %v271_v46 = vmul.f32 %v267_v28, %v1538_v37 }
 0x31a   :  { %v309_v31 = vmul.f32 2.0, %v307_v29  ;;  %v314_v52 = vmul.f32 %v312_v51, %v307_v29 }
 0x31b   :  { %v1246_v32 = vadd.f32 -1.0, %v269_v30 }
 0x31c   :  { %v1248_v33 = vadd.f32 -1.0, %v309_v31 }
 0x31d   :  { %273 = vrot.lane.b32.xlu2 %v1246_v32, %s1425_s1 }
 0x31e   :  { %316 = vrot.lane.b32.xlu0 %v1248_v33, %s1425_s1 }
 0x377   :  { %v274_v34 = vpop.permute.xlu2 %273 }
 0x378   :  { %v276_v35 = vmul.f32 %v274_v34, %v267_v28 }
 0x37a   :  { %278 = vrot.lane.b32.xlu2 %v276_v35, %s1425_s1 }
 0x37e   :  { %v116_v2 = vpop.f32.mrf.mxu0 }
 0x37f   :  { %v117_v4 = vadd.f32 %v1531_v12, %v116_v2 }
 0x390   :  { %v317_v36 = vpop.permute.xlu0 %316 }
 0x391   :  { %v319_v38 = vmul.f32 %v317_v36, %v307_v29 }
 0x393   :  { %321 = vrot.lane.b32.xlu0 %v319_v38, %s1425_s1 }
 0x3d4   :  { %v279_v47 = vpop.permute.xlu2 %278 }
 0x3d5   :  { %v1658_v49 = vadd.f32 %v279_v47, %v271_v46 }
 0x3d7   :  { %1312 = vtanh.f32 %v1658_v49 }
 0x3dd   :  { %v1313_v50 = vpop.eup %1312 }
 0x3de   :  { %284 = vrot.lane.b32.xlu1 %v1313_v50, %s1425_s1 }
 0x405   :  { %v322_v53 = vpop.permute.xlu0 %321 }
 0x406   :  { %v1662_v55 = vadd.f32 %v322_v53, %v314_v52 }
 0x408   :  { %1314 = vtanh.f32 %v1662_v55 }
 0x40e   :  { %v1315_v56 = vpop.eup %1314 }
 0x40f   :  { %327 = vrot.lane.b32.xlu2 %v1315_v56, %s1425_s1 }
 0x450   :  { %v285_v57 = vpop.permute.xlu1 %284 }
 0x451   :  { %v287_v37 = vmul.f32 %v285_v57, %v267_v28 }
 0x453   :  { %332 = vrot.lane.b32.xlu0 %v287_v37, %s1427_s16 }
 0x469   :  { %v328_v58 = vpop.permute.xlu2 %327 }
 0x46a   :  { %v330_v59 = vmul.f32 %v328_v58, %v307_v29 }
 0x46c   :  { %336 = vrot.lane.b32.xlu1 %v330_v59, %s1426_s15 }
 0x4c5   :  { %v333_v61 = vpop.permute.xlu0 %332 }
 0x4de   :  { %v337_v62 = vpop.permute.xlu1 %336 }
 0x4df   :  { %v339_v63 = vsel %vm204_vm6, %v333_v61, %v337_v62 }
 0x4e0   :  { %1249 = vmatmul.msk.f32.vlgmr.msrb.gmra.mxu1 %vm134_vm1, %v339_v63  ;;  %1250 = vmatmul.msk.f32.vlgmr.msrb.gmra.mxu2 %vm134_vm1, %v339_v63 }
 0x4e1   :  { %741 = vmatpush.msrb.mxu1 %v1459_v0  ;;  %761 = vmatpush.msrb.mxu2 %v1547_v39 }
 0x4e3   :  { %742 = vmatpush.msrb.mxu1 %v1464_v1  ;;  %762 = vmatpush.msrb.mxu2 %v1552_v40 }
 0x4e5   :  { %743 = vmatpush.msrb.mxu1 %v1471_v3  ;;  %763 = vmatpush.msrb.mxu2 %v1559_v41 }
 0x4e7   :  { %744 = vmatpush.msrb.mxu1 %v1481_v6  ;;  %764 = vmatpush.msrb.mxu2 %v1568_v42 }
 0x4e9   :  { %745 = vmatpush.msrb.mxu1 %v1488_v7  ;;  %765 = vmatpush.msrb.mxu2 %v1577_v43 }
 0x4eb   :  { %746 = vmatpush.msrb.mxu1 %v1495_v8  ;;  %766 = vmatpush.msrb.mxu2 %v1586_v44 }
 0x4ed   :  { %747 = vmatpush.msrb.mxu1 %v1502_v9  ;;  %767 = vmatpush.msrb.mxu2 %v1595_v45 }
 0x4ef   :  { %748 = vmatpush.msrb.mxu1 %v1509_v10  ;;  %768 = vmatpush.msrb.mxu2 %v1611_v48 }
 0x55d   :  { %v360_v5 = vpop.f32.mrf.mxu1 }
 0x55e   :  { %v383_v11 = vadd.f32 %v360_v5, %v117_v4 }
 0x560   :  { %v1251_v13 = vmul.f32 -1.442695, %v383_v11 }
 0x562   :  { %1316 = vpow2.f32 %v1251_v13 }
 0x563   :  { %v380_v14 = vpop.f32.mrf.mxu2 }
 0x564   :  { %v422_v15 = vadd.f32 %v1650_v54, %v380_v14 }
 0x566   :  { %v1253_v16 = vmul.f32 -1.442695, %v422_v15 }
 0x568   :  { %v1317_v17 = vpop.eup %1316  ;;  %1318 = vpow2.f32 %v1253_v16 }
 0x569   :  { %v387_v18 = vadd.f32 1.0, %v1317_v17 }
 0x56b   :  { %1320 = vrcp.f32 %v387_v18  ;;  %v399_v24 = vand.u32 2147483648, %v387_v18  ;;  %v397_v26 = vand.u32 2147483647, %v387_v18  ;;  %vm393_vm2 = vweird.f32 %v387_v18 }
 0x56d   :  { %v400_v30 = vor.u32 1.1754944e-38, %v399_v24  ;;  %vm398_vm4 = vcmp.eq.f32.partialorder %v397_v26, 8.507059e+37 }
 0x56e   :  { %v1319_v19 = vpop.eup %1318 }
 0x56f   :  { %v426_v20 = vadd.f32 1.0, %v1319_v19 }
 0x571   :  { %v1321_v21 = vpop.eup %1320  ;;  %1322 = vrcp.f32 %v426_v20  ;;  %v438_v34 = vand.u32 2147483648, %v426_v20  ;;  %v436_v38 = vand.u32 2147483647, %v426_v20  ;;  %vm432_vm7 = vweird.f32 %v426_v20 }
 0x572   :  { %v389_v22 = vmul.f32 %v1321_v21, %v387_v18  ;;  %vm394_vm15 = vweird.f32 %v1321_v21 }
 0x573   :  { %vm395_vm3 = vmor %vm393_vm2, %vm394_vm15  ;;  %v439_v50 = vor.u32 1.1754944e-38, %v438_v34  ;;  %vm437_vm9 = vcmp.eq.f32.partialorder %v436_v38, 8.507059e+37 }
 0x574   :  { %v390_v23 = vsub.f32 1.0, %v389_v22 }
 0x576   :  { %v391_v25 = vmul.f32 %v1321_v21, %v390_v23 }
 0x577   :  { %v1323_v27 = vpop.eup %1322 }
 0x578   :  { %v428_v28 = vmul.f32 %v1323_v27, %v426_v20  ;;  %v392_v29 = vadd.f32 %v1321_v21, %v391_v25  ;;  %vm433_vm5 = vweird.f32 %v1323_v27 }
 0x579   :  { %vm434_vm8 = vmor %vm432_vm7, %vm433_vm5 }
 0x57a   :  { %v429_v31 = vsub.f32 1.0, %v428_v28  ;;  %v396_v32 = vsel %vm395_vm3, %v1321_v21, %v392_v29 }
 0x57b   :  { %v401_v33 = vsel %vm398_vm4, %v400_v30, %v396_v32 }
 0x57c   :  { %v403_v35 = vmul.f32 2.0, %v401_v33  ;;  %v430_v36 = vmul.f32 %v1323_v27, %v429_v31  ;;  %v405_v60 = vmul.f32 %v401_v33, %v1658_v49 }
 0x57e   :  { %v1252_v46 = vadd.f32 -1.0, %v403_v35  ;;  %v431_v47 = vadd.f32 %v1323_v27, %v430_v36 }
 0x580   :  { %407 = vrot.lane.b32.xlu2 %v1252_v46, %s1425_s1  ;;  %v435_v51 = vsel %vm434_vm8, %v1323_v27, %v431_v47 }
 0x581   :  { %v440_v52 = vsel %vm437_vm9, %v439_v50, %v435_v51 }
 0x582   :  { %v442_v53 = vmul.f32 2.0, %v440_v52  ;;  %v444_v63 = vmul.f32 %v440_v52, %v1662_v55  ;;  %v62_v55 = vld [vmem:[%s1886_s0 + $0x18] sm:$0xff] }
 0x583   :  { %1235 = vmatmul.msk.f32.gmra.mxu0 %vm68_vm0, %v62_v55 }
 0x584   :  { %v1254_v56 = vadd.f32 -1.0, %v442_v53 }
 0x586   :  { %446 = vrot.lane.b32.xlu0 %v1254_v56, %s1425_s1 }
 0x5da   :  { %v408_v57 = vpop.permute.xlu2 %407 }
 0x5db   :  { %v410_v37 = vmul.f32 %v408_v57, %v401_v33 }
 0x5dd   :  { %412 = vrot.lane.b32.xlu1 %v410_v37, %s1425_s1 }
 0x5f8   :  { %v447_v58 = vpop.permute.xlu0 %446 }
 0x5f9   :  { %v449_v59 = vmul.f32 %v447_v58, %v440_v52 }
 0x5fb   :  { %451 = vrot.lane.b32.xlu2 %v449_v59, %s1425_s1 }
 0x64f   :  { %v413_v61 = vpop.permute.xlu1 %412 }
 0x650   :  { %v1698_v62 = vadd.f32 %v413_v61, %v405_v60 }
 0x652   :  { %1324 = vtanh.f32 %v1698_v62 }
 0x655   :  { %v452_v2 = vpop.permute.xlu2 %451 }
 0x656   :  { %v1702_v4 = vadd.f32 %v452_v2, %v444_v63 }
 0x658   :  { %v1325_v5 = vpop.eup %1324  ;;  %1326 = vtanh.f32 %v1702_v4 }
 0x659   :  { %418 = vrot.lane.b32.xlu0 %v1325_v5, %s1425_s1 }
 0x65e   :  { %v1327_v11 = vpop.eup %1326 }
 0x65f   :  { %457 = vrot.lane.b32.xlu1 %v1327_v11, %s1425_s1 }
 0x6cb   :  { %v419_v13 = vpop.permute.xlu0 %418 }
 0x6cc   :  { %v421_v49 = vmul.f32 %v419_v13, %v401_v33 }
 0x6ce   :  { %462 = vrot.lane.b32.xlu2 %v421_v49, %s1427_s16 }
 0x6d1   :  { %v458_v14 = vpop.permute.xlu1 %457 }
 0x6d2   :  { %v460_v15 = vmul.f32 %v458_v14, %v440_v52 }
 0x6d4   :  { %466 = vrot.lane.b32.xlu0 %v460_v15, %s1426_s15 }
 0x728   :  { %v463_v16 = vpop.permute.xlu2 %462 }
 0x746   :  { %v467_v17 = vpop.permute.xlu0 %466 }
 0x747   :  { %v469_v18 = vsel %vm204_vm6, %v463_v16, %v467_v17 }
 0x748   :  { %1255 = vmatmul.msk.f32.vlgmr.msrb.gmra.mxu3 %vm134_vm1, %v469_v18  ;;  %1256 = vmatmul.msk.f32.vlgmr.msra.gmra.mxu1 %vm134_vm1, %v469_v18 }
 0x749   :  { %871 = vmatpush.msrb.mxu3 %v1459_v0  ;;  %1001 = vmatpush.msra.mxu1 %v1459_v0 }
 0x74b   :  { %872 = vmatpush.msrb.mxu3 %v1464_v1  ;;  %1002 = vmatpush.msra.mxu1 %v1464_v1  ;;  %v119_v1 = vpop.f32.mrf.mxu0 }
 0x74c   :  { %v120_v19 = vadd.f32 %v1531_v12, %v119_v1 }
 0x74d   :  { %873 = vmatpush.msrb.mxu3 %v1471_v3  ;;  %1003 = vmatpush.msra.mxu1 %v1471_v3 }
 0x74f   :  { %874 = vmatpush.msrb.mxu3 %v1481_v6  ;;  %1004 = vmatpush.msra.mxu1 %v1481_v6 }
 0x751   :  { %875 = vmatpush.msrb.mxu3 %v1488_v7  ;;  %1005 = vmatpush.msra.mxu1 %v1488_v7 }
 0x753   :  { %876 = vmatpush.msrb.mxu3 %v1495_v8  ;;  %1006 = vmatpush.msra.mxu1 %v1495_v8 }
 0x755   :  { %877 = vmatpush.msrb.mxu3 %v1502_v9  ;;  %1007 = vmatpush.msra.mxu1 %v1502_v9 }
 0x757   :  { %878 = vmatpush.msrb.mxu3 %v1509_v10  ;;  %1008 = vmatpush.msra.mxu1 %v1509_v10 }
 0x7c5   :  { %v510_v0 = vpop.f32.mrf.mxu1 }
 0x7c6   :  { %v552_v3 = vadd.f32 %v1650_v54, %v510_v0 }
 0x7c8   :  { %v1259_v6 = vmul.f32 -1.442695, %v552_v3 }
 0x7ca   :  { %1328 = vpow2.f32 %v1259_v6 }
 0x7cb   :  { %v490_v7 = vpop.f32.mrf.mxu3 }
 0x7cc   :  { %v513_v20 = vadd.f32 %v490_v7, %v120_v19 }
 0x7ce   :  { %v1257_v21 = vmul.f32 -1.442695, %v513_v20 }
 0x7d0   :  { %v1329_v8 = vpop.eup %1328  ;;  %1330 = vpow2.f32 %v1257_v21 }
 0x7d1   :  { %v556_v22 = vadd.f32 1.0, %v1329_v8 }
 0x7d3   :  { %1332 = vrcp.f32 %v556_v22  ;;  %v568_v26 = vand.u32 2147483648, %v556_v22  ;;  %v566_v28 = vand.u32 2147483647, %v556_v22  ;;  %vm562_vm11 = vweird.f32 %v556_v22 }
 0x7d5   :  { %v569_v32 = vor.u32 1.1754944e-38, %v568_v26  ;;  %vm567_vm13 = vcmp.eq.f32.partialorder %v566_v28, 8.507059e+37 }
 0x7d6   :  { %v1331_v9 = vpop.eup %1330 }
 0x7d7   :  { %v517_v23 = vadd.f32 1.0, %v1331_v9 }
 0x7d9   :  { %v1333_v24 = vpop.eup %1332  ;;  %1334 = vrcp.f32 %v517_v23  ;;  %v529_v36 = vand.u32 2147483648, %v517_v23  ;;  %v527_v47 = vand.u32 2147483647, %v517_v23  ;;  %vm523_vm15 = vweird.f32 %v517_v23 }
 0x7da   :  { %v558_v10 = vmul.f32 %v1333_v24, %v556_v22  ;;  %vm563_vm10 = vweird.f32 %v1333_v24 }
 0x7db   :  { %vm564_vm12 = vmor %vm562_vm11, %vm563_vm10  ;;  %v530_v52 = vor.u32 1.1754944e-38, %v529_v36  ;;  %vm528_vm3 = vcmp.eq.f32.partialorder %v527_v47, 8.507059e+37 }
 0x7dc   :  { %v559_v25 = vsub.f32 1.0, %v558_v10 }
 0x7de   :  { %v560_v27 = vmul.f32 %v1333_v24, %v559_v25 }
 0x7df   :  { %v1335_v29 = vpop.eup %1334 }
 0x7e0   :  { %v519_v30 = vmul.f32 %v1335_v29, %v517_v23  ;;  %v561_v31 = vadd.f32 %v1333_v24, %v560_v27  ;;  %vm524_vm14 = vweird.f32 %v1335_v29 }
 0x7e1   :  { %vm525_vm2 = vmor %vm523_vm15, %vm524_vm14 }
 0x7e2   :  { %v520_v33 = vsub.f32 1.0, %v519_v30  ;;  %v565_v34 = vsel %vm564_vm12, %v1333_v24, %v561_v31 }
 0x7e3   :  { %v570_v35 = vsel %vm567_vm13, %v569_v32, %v565_v34 }
 0x7e4   :  { %v572_v38 = vmul.f32 2.0, %v570_v35  ;;  %v521_v46 = vmul.f32 %v1335_v29, %v520_v33  ;;  %v574_v63 = vmul.f32 %v570_v35, %v1702_v4 }
 0x7e6   :  { %v1260_v50 = vadd.f32 -1.0, %v572_v38  ;;  %v522_v51 = vadd.f32 %v1335_v29, %v521_v46 }
 0x7e8   :  { %576 = vrot.lane.b32.xlu2 %v1260_v50, %s1425_s1  ;;  %v526_v53 = vsel %vm525_vm2, %v1335_v29, %v522_v51 }
 0x7e9   :  { %v531_v56 = vsel %vm528_vm3, %v530_v52, %v526_v53 }
 0x7ea   :  { %v533_v57 = vmul.f32 2.0, %v531_v56  ;;  %v535_v13 = vmul.f32 %v531_v56, %v1698_v62  ;;  %v63_v62 = vld [vmem:[%s1886_s0 + $0x20] sm:$0xff] }
 0x7eb   :  { %1236 = vmatmul.msk.f32.gmra.mxu0 %vm68_vm0, %v63_v62 }
 0x7ec   :  { %v1258_v37 = vadd.f32 -1.0, %v533_v57 }
 0x7ee   :  { %537 = vrot.lane.b32.xlu1 %v1258_v37, %s1425_s1 }
 0x842   :  { %v577_v58 = vpop.permute.xlu2 %576 }
 0x843   :  { %v579_v59 = vmul.f32 %v577_v58, %v570_v35 }
 0x845   :  { %581 = vrot.lane.b32.xlu1 %v579_v59, %s1425_s1 }
 0x860   :  { %v538_v60 = vpop.permute.xlu1 %537 }
 0x861   :  { %v540_v61 = vmul.f32 %v538_v60, %v531_v56 }
 0x863   :  { %542 = vrot.lane.b32.xlu0 %v540_v61, %s1425_s1 }
 0x8b7   :  { %v582_v2 = vpop.permute.xlu1 %581 }
 0x8b8   :  { %v1739_v5 = vadd.f32 %v582_v2, %v574_v63 }
 0x8ba   :  { %1336 = vtanh.f32 %v1739_v5 }
 0x8c0   :  { %v1337_v11 = vpop.eup %1336 }
 0x8c1   :  { %587 = vrot.lane.b32.xlu0 %v1337_v11, %s1425_s1  ;;  %v64_v11 = vld [vmem:[%s1886_s0 + $0x28] sm:$0xff] }
 0x8c2   :  { %1237 = vmatmul.msk.f32.gmra.mxu0 %vm68_vm0, %v64_v11 }
 0x8d5   :  { %v543_v49 = vpop.permute.xlu0 %542 }
 0x8d6   :  { %v1744_v14 = vadd.f32 %v543_v49, %v535_v13 }
 0x8d8   :  { %1338 = vtanh.f32 %v1744_v14 }
 0x8de   :  { %v1339_v15 = vpop.eup %1338 }
 0x8df   :  { %548 = vrot.lane.b32.xlu2 %v1339_v15, %s1425_s1 }
 0x933   :  { %v588_v55 = vpop.permute.xlu0 %587 }
 0x934   :  { %v590_v4 = vmul.f32 %v588_v55, %v570_v35 }
 0x936   :  { %596 = vrot.lane.b32.xlu2 %v590_v4, %s1426_s15 }
 0x939   :  { %v549_v16 = vpop.permute.xlu2 %548 }
 0x93a   :  { %v551_v17 = vmul.f32 %v549_v16, %v531_v56 }
 0x93c   :  { %592 = vrot.lane.b32.xlu1 %v551_v17, %s1427_s16 }
 0x990   :  { %v597_v18 = vpop.permute.xlu2 %596 }
 0x9ae   :  { %v593_v0 = vpop.permute.xlu1 %592 }
 0x9af   :  { %v599_v1 = vsel %vm204_vm6, %v593_v0, %v597_v18 }
 0x9b0   :  { %1261 = vmatmul.msk.f32.vlgmr.msra.gmra.mxu2 %vm134_vm1, %v599_v1  ;;  %1262 = vmatmul.msk.f32.vlgmr.msra.gmra.mxu3 %vm134_vm1, %v599_v1 }
 0x9b1   :  { %1021 = vmatpush.msra.mxu2 %v1547_v39  ;;  %1131 = vmatpush.msra.mxu3 %v1547_v39  ;;  %v122_v39 = vpop.f32.mrf.mxu0 }
 0x9b3   :  { %1022 = vmatpush.msra.mxu2 %v1552_v40  ;;  %1132 = vmatpush.msra.mxu3 %v1552_v40  ;;  %v123_v40 = vadd.f32 %v1531_v12, %v122_v39 }
 0x9b5   :  { %1023 = vmatpush.msra.mxu2 %v1559_v41  ;;  %1133 = vmatpush.msra.mxu3 %v1559_v41 }
 0x9b7   :  { %1024 = vmatpush.msra.mxu2 %v1568_v42  ;;  %1134 = vmatpush.msra.mxu3 %v1568_v42 }
 0x9b9   :  { %1025 = vmatpush.msra.mxu2 %v1577_v43  ;;  %1135 = vmatpush.msra.mxu3 %v1577_v43  ;;  %v125_v16 = vpop.f32.mrf.mxu0 }
 0x9ba   :  { %v126_v17 = vadd.f32 %v1531_v12, %v125_v16 }
 0x9bb   :  { %1026 = vmatpush.msra.mxu2 %v1586_v44  ;;  %1136 = vmatpush.msra.mxu3 %v1586_v44 }
 0x9bd   :  { %1027 = vmatpush.msra.mxu2 %v1595_v45  ;;  %1137 = vmatpush.msra.mxu3 %v1595_v45 }
 0x9bf   :  { %1028 = vmatpush.msra.mxu2 %v1611_v48  ;;  %1138 = vmatpush.msra.mxu3 %v1611_v48 }
 0xa33   :  { %v620_v41 = vpop.f32.mrf.mxu2  ;;  %v640_v42 = vpop.f32.mrf.mxu3 }
 0xa34   :  { %v643_v3 = vadd.f32 %v620_v41, %v123_v40  ;;  %v682_v43 = vadd.f32 %v1650_v54, %v640_v42 }
 0xa36   :  { %v1263_v6 = vmul.f32 -1.442695, %v643_v3  ;;  %v1265_v19 = vmul.f32 -1.442695, %v682_v43 }
 0xa38   :  { %1340 = vpow2.f32 %v1263_v6 }
 0xa39   :  { %1342 = vpow2.f32 %v1265_v19 }
 0xa3e   :  { %v1341_v44 = vpop.eup %1340 }
 0xa3f   :  { %v1343_v7 = vpop.eup %1342  ;;  %v647_v20 = vadd.f32 1.0, %v1341_v44 }
 0xa40   :  { %v686_v45 = vadd.f32 1.0, %v1343_v7 }
 0xa41   :  { %1344 = vrcp.f32 %v647_v20  ;;  %v659_v24 = vand.u32 2147483648, %v647_v20  ;;  %v657_v26 = vand.u32 2147483647, %v647_v20  ;;  %vm653_vm7 = vweird.f32 %v647_v20 }
 0xa42   :  { %1346 = vrcp.f32 %v686_v45  ;;  %v698_v10 = vand.u32 2147483648, %v686_v45  ;;  %v696_v28 = vand.u32 2147483647, %v686_v45  ;;  %vm692_vm8 = vweird.f32 %v686_v45 }
 0xa43   :  { %v660_v31 = vor.u32 1.1754944e-38, %v659_v24  ;;  %vm658_vm11 = vcmp.eq.f32.partialorder %v657_v26, 8.507059e+37 }
 0xa44   :  { %v699_v32 = vor.u32 1.1754944e-38, %v698_v10  ;;  %vm697_vm12 = vcmp.eq.f32.partialorder %v696_v28, 8.507059e+37 }
 0xa47   :  { %v1345_v21 = vpop.eup %1344 }
 0xa48   :  { %v1347_v48 = vpop.eup %1346  ;;  %v649_v8 = vmul.f32 %v1345_v21, %v647_v20  ;;  %vm654_vm4 = vweird.f32 %v1345_v21 }
 0xa49   :  { %v688_v22 = vmul.f32 %v1347_v48, %v686_v45  ;;  %vm693_vm5 = vweird.f32 %v1347_v48  ;;  %vm655_vm9 = vmor %vm653_vm7, %vm654_vm4 }
 0xa4a   :  { %v650_v9 = vsub.f32 1.0, %v649_v8  ;;  %vm694_vm10 = vmor %vm692_vm8, %vm693_vm5 }
 0xa4b   :  { %v689_v23 = vsub.f32 1.0, %v688_v22 }
 0xa4c   :  { %v651_v25 = vmul.f32 %v1345_v21, %v650_v9 }
 0xa4d   :  { %v690_v27 = vmul.f32 %v1347_v48, %v689_v23 }
 0xa4e   :  { %v652_v29 = vadd.f32 %v1345_v21, %v651_v25 }
 0xa4f   :  { %v691_v30 = vadd.f32 %v1347_v48, %v690_v27 }
 0xa50   :  { %v656_v33 = vsel %vm655_vm9, %v1345_v21, %v652_v29 }
 0xa51   :  { %v695_v34 = vsel %vm694_vm10, %v1347_v48, %v691_v30  ;;  %v661_v35 = vsel %vm658_vm11, %v660_v31, %v656_v33 }
 0xa52   :  { %v700_v36 = vsel %vm697_vm12, %v699_v32, %v695_v34  ;;  %v663_v38 = vmul.f32 2.0, %v661_v35  ;;  %v665_v57 = vmul.f32 %v661_v35, %v1744_v14 }
 0xa53   :  { %v702_v46 = vmul.f32 2.0, %v700_v36  ;;  %v704_v60 = vmul.f32 %v700_v36, %v1739_v5 }
 0xa54   :  { %v1264_v47 = vadd.f32 -1.0, %v663_v38 }
 0xa55   :  { %v1266_v50 = vadd.f32 -1.0, %v702_v46 }
 0xa56   :  { %667 = vrot.lane.b32.xlu0 %v1264_v47, %s1425_s1 }
 0xa57   :  { %706 = vrot.lane.b32.xlu1 %v1266_v50, %s1425_s1 }
 0xac8   :  { %v668_v51 = vpop.permute.xlu0 %667 }
 0xac9   :  { %v707_v52 = vpop.permute.xlu1 %706  ;;  %v670_v53 = vmul.f32 %v668_v51, %v661_v35 }
 0xaca   :  { %v709_v56 = vmul.f32 %v707_v52, %v700_v36 }
 0xacb   :  { %672 = vrot.lane.b32.xlu2 %v670_v53, %s1425_s1 }
 0xacc   :  { %711 = vrot.lane.b32.xlu0 %v709_v56, %s1425_s1 }
 0xb25   :  { %v673_v37 = vpop.permute.xlu2 %672 }
 0xb26   :  { %v1780_v58 = vadd.f32 %v673_v37, %v665_v57 }
 0xb28   :  { %1348 = vtanh.f32 %v1780_v58 }
 0xb2e   :  { %v1349_v59 = vpop.eup %1348 }
 0xb2f   :  { %678 = vrot.lane.b32.xlu1 %v1349_v59, %s1425_s1 }
 0xb3e   :  { %v712_v61 = vpop.permute.xlu0 %711 }
 0xb3f   :  { %v1785_v63 = vadd.f32 %v712_v61, %v704_v60  ;;  %v65_v61 = vld [vmem:[%s1886_s0 + $0x30] sm:$0xff] }
 0xb40   :  { %1238 = vmatmul.msk.f32.gmra.mxu0 %vm68_vm0, %v65_v61 }
 0xb41   :  { %1350 = vtanh.f32 %v1785_v63 }
 0xb47   :  { %v1351_v2 = vpop.eup %1350 }
 0xb48   :  { %717 = vrot.lane.b32.xlu2 %v1351_v2, %s1425_s1 }
 0xba1   :  { %v679_v13 = vpop.permute.xlu1 %678 }
 0xba2   :  { %v681_v49 = vmul.f32 %v679_v13, %v661_v35  ;;  %v718_v14 = vpop.permute.xlu2 %717 }
 0xba3   :  { %v720_v15 = vmul.f32 %v718_v14, %v700_v36 }
 0xba4   :  { %722 = vrot.lane.b32.xlu0 %v681_v49, %s1427_s16 }
 0xba5   :  { %726 = vrot.lane.b32.xlu1 %v720_v15, %s1426_s15 }
 0xbbd   :  { %v128_v49 = vpop.f32.mrf.mxu0 }
 0xc16   :  { %v723_v5 = vpop.permute.xlu0 %722 }
 0xc17   :  { %v727_v55 = vpop.permute.xlu1 %726 }
 0xc18   :  { %v729_v4 = vsel %vm204_vm6, %v723_v5, %v727_v55  ;;  %v1830_v55 = vld [vmem:[#allocation2 + $0x10] ss:$0 sm:$0xff] }
 0xc19   :  { %1267 = vmatmul.msk.f32.vlgmr.msrb.gmra.mxu1 %vm134_vm1, %v729_v4  ;;  %1268 = vmatmul.msk.f32.vlgmr.msrb.gmra.mxu2 %vm134_vm1, %v729_v4  ;;  %v129_v4 = vadd.f32 %v1830_v55, %v128_v49 }
 0xc96   :  { %v750_v62 = vpop.f32.mrf.mxu1 }
 0xc97   :  { %v773_v18 = vadd.f32 %v750_v62, %v126_v17 }
 0xc99   :  { %v1269_v0 = vmul.f32 -1.442695, %v773_v18 }
 0xc9b   :  { %1352 = vpow2.f32 %v1269_v0 }
 0xc9c   :  { %v770_v1 = vpop.f32.mrf.mxu2 }
 0xc9d   :  { %v812_v39 = vadd.f32 %v1650_v54, %v770_v1 }
 0xc9f   :  { %v1271_v40 = vmul.f32 -1.442695, %v812_v39 }
 0xca1   :  { %v1353_v41 = vpop.eup %1352  ;;  %1354 = vpow2.f32 %v1271_v40 }
 0xca2   :  { %v777_v42 = vadd.f32 1.0, %v1353_v41 }
 0xca4   :  { %1356 = vrcp.f32 %v777_v42  ;;  %v789_v7 = vand.u32 2147483648, %v777_v42  ;;  %v787_v20 = vand.u32 2147483647, %v777_v42  ;;  %vm783_vm14 = vweird.f32 %v777_v42 }
 0xca6   :  { %v790_v8 = vor.u32 1.1754944e-38, %v789_v7  ;;  %vm788_vm2 = vcmp.eq.f32.partialorder %v787_v20, 8.507059e+37 }
 0xca7   :  { %v1355_v3 = vpop.eup %1354 }
 0xca8   :  { %v816_v43 = vadd.f32 1.0, %v1355_v3 }
 0xcaa   :  { %v1357_v6 = vpop.eup %1356  ;;  %1358 = vrcp.f32 %v816_v43  ;;  %v828_v24 = vand.u32 2147483648, %v816_v43  ;;  %v826_v26 = vand.u32 2147483647, %v816_v43  ;;  %vm822_vm4 = vweird.f32 %v816_v43 }
 0xcab   :  { %v779_v19 = vmul.f32 %v1357_v6, %v777_v42  ;;  %vm784_vm13 = vweird.f32 %v1357_v6 }
 0xcac   :  { %vm785_vm15 = vmor %vm783_vm14, %vm784_vm13  ;;  %v829_v29 = vor.u32 1.1754944e-38, %v828_v24  ;;  %vm827_vm7 = vcmp.eq.f32.partialorder %v826_v26, 8.507059e+37 }
 0xcad   :  { %v780_v44 = vsub.f32 1.0, %v779_v19 }
 0xcaf   :  { %v781_v12 = vmul.f32 %v1357_v6, %v780_v44 }
 0xcb0   :  { %v1359_v45 = vpop.eup %1358 }
 0xcb1   :  { %v818_v21 = vmul.f32 %v1359_v45, %v816_v43  ;;  %v782_v48 = vadd.f32 %v1357_v6, %v781_v12  ;;  %vm823_vm3 = vweird.f32 %v1359_v45 }
 0xcb2   :  { %vm824_vm5 = vmor %vm822_vm4, %vm823_vm3 }
 0xcb3   :  { %v819_v22 = vsub.f32 1.0, %v818_v21  ;;  %v786_v9 = vsel %vm785_vm15, %v1357_v6, %v782_v48 }
 0xcb4   :  { %v791_v23 = vsel %vm788_vm2, %v790_v8, %v786_v9 }
 0xcb5   :  { %v793_v10 = vmul.f32 2.0, %v791_v23  ;;  %v820_v25 = vmul.f32 %v1359_v45, %v819_v22  ;;  %v795_v46 = vmul.f32 %v791_v23, %v1780_v58 }
 0xcb7   :  { %v1270_v27 = vadd.f32 -1.0, %v793_v10  ;;  %v821_v28 = vadd.f32 %v1359_v45, %v820_v25 }
 0xcb9   :  { %797 = vrot.lane.b32.xlu2 %v1270_v27, %s1425_s1  ;;  %v825_v30 = vsel %vm824_vm5, %v1359_v45, %v821_v28 }
 0xcba   :  { %v830_v31 = vsel %vm827_vm7, %v829_v29, %v825_v30 }
 0xcbb   :  { %v832_v32 = vmul.f32 2.0, %v830_v31  ;;  %v834_v51 = vmul.f32 %v830_v31, %v1785_v63  ;;  %v66_v63 = vld [vmem:[%s1886_s0 + $0x38] sm:$0xff] }
 0xcbc   :  { %1239 = vmatmul.msk.f32.gmra.mxu0 %vm68_vm0, %v66_v63 }
 0xcbd   :  { %v1272_v33 = vadd.f32 -1.0, %v832_v32 }
 0xcbf   :  { %836 = vrot.lane.b32.xlu0 %v1272_v33, %s1425_s1 }
 0xd13   :  { %v798_v34 = vpop.permute.xlu2 %797 }
 0xd14   :  { %v800_v35 = vmul.f32 %v798_v34, %v791_v23 }
 0xd16   :  { %802 = vrot.lane.b32.xlu1 %v800_v35, %s1425_s1 }
 0xd31   :  { %v837_v36 = vpop.permute.xlu0 %836 }
 0xd32   :  { %v839_v38 = vmul.f32 %v837_v36, %v830_v31 }
 0xd34   :  { %841 = vrot.lane.b32.xlu2 %v839_v38, %s1425_s1 }
 0xd39   :  { %v1827_v14 = vpop.f32.mrf.mxu0 }
 0xd88   :  { %v803_v47 = vpop.permute.xlu1 %802 }
 0xd89   :  { %v1805_v50 = vadd.f32 %v803_v47, %v795_v46 }
 0xd8b   :  { %1360 = vtanh.f32 %v1805_v50 }
 0xd8e   :  { %v842_v52 = vpop.permute.xlu2 %841 }
 0xd8f   :  { %v1809_v53 = vadd.f32 %v842_v52, %v834_v51 }
 0xd91   :  { %v1361_v56 = vpop.eup %1360  ;;  %1362 = vtanh.f32 %v1809_v53 }
 0xd92   :  { %808 = vrot.lane.b32.xlu0 %v1361_v56, %s1425_s1 }
 0xd97   :  { %v1363_v57 = vpop.eup %1362 }
 0xd98   :  { %847 = vrot.lane.b32.xlu1 %v1363_v57, %s1425_s1 }
 0xe04   :  { %v809_v37 = vpop.permute.xlu0 %808 }
 0xe05   :  { %v811_v58 = vmul.f32 %v809_v37, %v791_v23 }
 0xe07   :  { %852 = vrot.lane.b32.xlu2 %v811_v58, %s1427_s16 }
 0xe0a   :  { %v848_v59 = vpop.permute.xlu1 %847 }
 0xe0b   :  { %v850_v60 = vmul.f32 %v848_v59, %v830_v31  ;;  %v132_v59 = vadd.f32 %v1830_v55, %v1827_v14 }
 0xe0d   :  { %856 = vrot.lane.b32.xlu0 %v850_v60, %s1426_s15 }
 0xe61   :  { %v853_v2 = vpop.permute.xlu2 %852 }
 0xe7f   :  { %v857_v11 = vpop.permute.xlu0 %856 }
 0xe80   :  { %v859_v13 = vsel %vm204_vm6, %v853_v2, %v857_v11  ;;  %v1854_v11 = vld [vmem:[#allocation2 + $0x11] ss:$0 sm:$0xff] }
 0xe81   :  { %1273 = vmatmul.msk.f32.vlgmr.msrb.gmra.mxu3 %vm134_vm1, %v859_v13  ;;  %1274 = vmatmul.msk.f32.vlgmr.msrb.gmra.mxu0 %vm134_vm1, %v859_v13 }
 0xefe   :  { %v900_v15 = vpop.f32.mrf.mxu0 }
 0xeff   :  { %v942_v5 = vadd.f32 %v1650_v54, %v900_v15 }
 0xf01   :  { %v1277_v16 = vmul.f32 -1.442695, %v942_v5 }
 0xf03   :  { %1364 = vpow2.f32 %v1277_v16 }
 0xf04   :  { %v880_v17 = vpop.f32.mrf.mxu3 }
 0xf05   :  { %v903_v62 = vadd.f32 %v880_v17, %v129_v4 }
 0xf07   :  { %v1275_v18 = vmul.f32 -1.442695, %v903_v62 }
 0xf09   :  { %v1365_v0 = vpop.eup %1364  ;;  %1366 = vpow2.f32 %v1275_v18 }
 0xf0a   :  { %v946_v1 = vadd.f32 1.0, %v1365_v0 }
 0xf0c   :  { %1368 = vrcp.f32 %v946_v1  ;;  %v958_v54 = vand.u32 2147483648, %v946_v1  ;;  %v956_v6 = vand.u32 2147483647, %v946_v1  ;;  %vm952_vm8 = vweird.f32 %v946_v1 }
 0xf0e   :  { %v959_v12 = vor.u32 1.1754944e-38, %v958_v54  ;;  %vm957_vm10 = vcmp.eq.f32.partialorder %v956_v6, 8.507059e+37 }
 0xf0f   :  { %v1367_v39 = vpop.eup %1366 }
 0xf10   :  { %v907_v40 = vadd.f32 1.0, %v1367_v39 }
 0xf12   :  { %v1369_v41 = vpop.eup %1368  ;;  %1370 = vrcp.f32 %v907_v40  ;;  %v919_v48 = vand.u32 2147483648, %v907_v40  ;;  %v917_v9 = vand.u32 2147483647, %v907_v40  ;;  %vm913_vm12 = vweird.f32 %v907_v40 }
 0xf13   :  { %v948_v42 = vmul.f32 %v1369_v41, %v946_v1  ;;  %vm953_vm0 = vweird.f32 %v1369_v41 }
 0xf14   :  { %vm954_vm9 = vmor %vm952_vm8, %vm953_vm0  ;;  %v920_v10 = vor.u32 1.1754944e-38, %v919_v48  ;;  %vm918_vm14 = vcmp.eq.f32.partialorder %v917_v9, 8.507059e+37 }
 0xf15   :  { %v949_v3 = vsub.f32 1.0, %v948_v42 }
 0xf17   :  { %v950_v43 = vmul.f32 %v1369_v41, %v949_v3 }
 0xf18   :  { %v1371_v19 = vpop.eup %1370 }
 0xf19   :  { %v909_v44 = vmul.f32 %v1371_v19, %v907_v40  ;;  %v951_v7 = vadd.f32 %v1369_v41, %v950_v43  ;;  %vm914_vm11 = vweird.f32 %v1371_v19 }
 0xf1a   :  { %vm915_vm13 = vmor %vm913_vm12, %vm914_vm11 }
 0xf1b   :  { %v910_v20 = vsub.f32 1.0, %v909_v44  ;;  %v955_v45 = vsel %vm954_vm9, %v1369_v41, %v951_v7 }
 0xf1c   :  { %v960_v21 = vsel %vm957_vm10, %v959_v12, %v955_v45 }
 0xf1d   :  { %v962_v8 = vmul.f32 2.0, %v960_v21  ;;  %v911_v22 = vmul.f32 %v1371_v19, %v910_v20  ;;  %v964_v33 = vmul.f32 %v960_v21, %v1809_v53 }
 0xf1f   :  { %v1278_v23 = vadd.f32 -1.0, %v962_v8  ;;  %v912_v24 = vadd.f32 %v1371_v19, %v911_v22 }
 0xf21   :  { %966 = vrot.lane.b32.xlu2 %v1278_v23, %s1425_s1  ;;  %v916_v25 = vsel %vm915_vm13, %v1371_v19, %v912_v24  ;;  %vm1196_vm13 = vcmask 785408  }
 0xf22   :  { %v921_v26 = vsel %vm918_vm14, %v920_v10, %v916_v25 }
 0xf23   :  { %v923_v27 = vmul.f32 2.0, %v921_v26  ;;  %v925_v38 = vmul.f32 %v921_v26, %v1805_v50 }
 0xf25   :  { %v1276_v28 = vadd.f32 -1.0, %v923_v27 }
 0xf27   :  { %927 = vrot.lane.b32.xlu1 %v1276_v28, %s1425_s1 }
 0xf7b   :  { %v967_v29 = vpop.permute.xlu2 %966 }
 0xf7c   :  { %v969_v30 = vmul.f32 %v967_v29, %v960_v21 }
 0xf7e   :  { %971 = vrot.lane.b32.xlu1 %v969_v30, %s1425_s1 }
 0xf99   :  { %v928_v31 = vpop.permute.xlu1 %927 }
 0xf9a   :  { %v930_v32 = vmul.f32 %v928_v31, %v921_v26 }
 0xf9c   :  { %932 = vrot.lane.b32.xlu0 %v930_v32, %s1425_s1 }
 0xff0   :  { %v972_v34 = vpop.permute.xlu1 %971 }
 0xff1   :  { %v1838_v35 = vadd.f32 %v972_v34, %v964_v33 }
 0xff3   :  { %1372 = vtanh.f32 %v1838_v35 }
 0xff9   :  { %v1373_v36 = vpop.eup %1372 }
 0xffa   :  { %977 = vrot.lane.b32.xlu0 %v1373_v36, %s1425_s1 }
0x100e   :  { %v933_v46 = vpop.permute.xlu0 %932 }
0x100f   :  { %v1843_v47 = vadd.f32 %v933_v46, %v925_v38 }
0x1011   :  { %1374 = vtanh.f32 %v1843_v47 }
0x1017   :  { %v1375_v51 = vpop.eup %1374 }
0x1018   :  { %938 = vrot.lane.b32.xlu2 %v1375_v51, %s1425_s1 }
0x106c   :  { %v978_v52 = vpop.permute.xlu0 %977 }
0x106d   :  { %v980_v53 = vmul.f32 %v978_v52, %v960_v21 }
0x106f   :  { %986 = vrot.lane.b32.xlu2 %v980_v53, %s1426_s15 }
0x1072   :  { %v939_v56 = vpop.permute.xlu2 %938 }
0x1073   :  { %v941_v57 = vmul.f32 %v939_v56, %v921_v26 }
0x1075   :  { %982 = vrot.lane.b32.xlu1 %v941_v57, %s1427_s16 }
0x10c9   :  { %v987_v37 = vpop.permute.xlu2 %986 }
0x10e7   :  { %v983_v58 = vpop.permute.xlu1 %982 }
0x10e8   :  { %v989_v50 = vsel %vm204_vm6, %v983_v58, %v987_v37 }
0x10e9   :  { %1279 = vmatmul.msk.f32.vlgmr.msra.gmra.mxu1 %vm134_vm1, %v989_v50  ;;  %1280 = vmatmul.msk.f32.vlgmr.msra.gmra.mxu2 %vm134_vm1, %v989_v50 }
0x1166   :  { %v1010_v60 = vpop.f32.mrf.mxu1 }
0x1167   :  { %v1033_v61 = vadd.f32 %v1010_v60, %v132_v59 }
0x1169   :  { %v1281_v63 = vmul.f32 -1.442695, %v1033_v61 }
0x116b   :  { %1376 = vpow2.f32 %v1281_v63 }
0x116c   :  { %v1030_v2 = vpop.f32.mrf.mxu2 }
0x116d   :  { %v1072_v13 = vadd.f32 %v1854_v11, %v1030_v2 }
0x116f   :  { %v1283_v49 = vmul.f32 -1.442695, %v1072_v13 }
0x1171   :  { %v1377_v15 = vpop.eup %1376  ;;  %1378 = vpow2.f32 %v1283_v49 }
0x1172   :  { %v1037_v5 = vadd.f32 1.0, %v1377_v15 }
0x1174   :  { %1380 = vrcp.f32 %v1037_v5  ;;  %v1049_v55 = vand.u32 2147483648, %v1037_v5  ;;  %v1047_v0 = vand.u32 2147483647, %v1037_v5  ;;  %vm1043_vm2 = vweird.f32 %v1037_v5 }
0x1176   :  { %v1050_v41 = vor.u32 1.1754944e-38, %v1049_v55  ;;  %vm1048_vm4 = vcmp.eq.f32.partialorder %v1047_v0, 8.507059e+37  ;;  %v39_v55 = vld [vmem:[#allocation2 + $0x22] sm:$0xff]  ;;  %v37_v0 = vld [vmem:[#allocation2 + $0x12] sm:$0xff] }
0x1177   :  { %v1379_v4 = vpop.eup %1378 }
0x1178   :  { %v1076_v16 = vadd.f32 1.0, %v1379_v4 }
0x117a   :  { %v1381_v17 = vpop.eup %1380  ;;  %1382 = vrcp.f32 %v1076_v16  ;;  %v1088_v43 = vand.u32 2147483648, %v1076_v16  ;;  %v1086_v44 = vand.u32 2147483647, %v1076_v16  ;;  %vm1082_vm7 = vweird.f32 %v1076_v16 }
0x117b   :  { %v1039_v62 = vmul.f32 %v1381_v17, %v1037_v5  ;;  %vm1044_vm15 = vweird.f32 %v1381_v17 }
0x117c   :  { %vm1045_vm3 = vmor %vm1043_vm2, %vm1044_vm15  ;;  %v1089_v20 = vor.u32 1.1754944e-38, %v1088_v43  ;;  %vm1087_vm8 = vcmp.eq.f32.partialorder %v1086_v44, 8.507059e+37  ;;  %v1297_v44 = vld [vmem:[#allocation2 + $0x32] ss:$0 sm:$0xff] }
0x117d   :  { %v1040_v14 = vsub.f32 1.0, %v1039_v62 }
0x117f   :  { %v1041_v18 = vmul.f32 %v1381_v17, %v1040_v14  ;;  %v40_v14 = vld [vmem:[#allocation2 + $0x2a] sm:$0xff] }
0x1180   :  { %v1383_v1 = vpop.eup %1382  ;;  %1218 = vmatpush.msra.mxu0 %v40_v14 }
0x1181   :  { %v1078_v39 = vmul.f32 %v1383_v1, %v1076_v16  ;;  %v1042_v40 = vadd.f32 %v1381_v17, %v1041_v18  ;;  %vm1083_vm5 = vweird.f32 %v1383_v1  ;;  %v38_v18 = vld [vmem:[#allocation2 + $0x1a] sm:$0xff] }
0x1182   :  { %vm1084_vm0 = vmor %vm1082_vm7, %vm1083_vm5  ;;  %1219 = vmatpush.msra.mxu0 %v39_v55 }
0x1183   :  { %v1079_v42 = vsub.f32 1.0, %v1078_v39  ;;  %v1046_v3 = vsel %vm1045_vm3, %v1381_v17, %v1042_v40 }
0x1184   :  { %v1051_v54 = vsel %vm1048_vm4, %v1050_v41, %v1046_v3  ;;  %1220 = vmatpush.msra.mxu0 %v38_v18 }
0x1185   :  { %v1053_v6 = vmul.f32 2.0, %v1051_v54  ;;  %v1080_v19 = vmul.f32 %v1383_v1, %v1079_v42  ;;  %v1055_v10 = vmul.f32 %v1051_v54, %v1843_v47 }
0x1186   :  { %1221 = vmatpush.msra.mxu0 %v37_v0 }
0x1187   :  { %v1282_v7 = vadd.f32 -1.0, %v1053_v6  ;;  %v1081_v12 = vadd.f32 %v1383_v1, %v1080_v19 }
0x1189   :  { %1057 = vrot.lane.b32.xlu0 %v1282_v7, %s1425_s1  ;;  %v1085_v45 = vsel %vm1084_vm0, %v1383_v1, %v1081_v12 }
0x118a   :  { %v1090_v21 = vsel %vm1087_vm8, %v1089_v20, %v1085_v45 }
0x118b   :  { %v1092_v48 = vmul.f32 2.0, %v1090_v21  ;;  %v1094_v28 = vmul.f32 %v1090_v21, %v1838_v35 }
0x118d   :  { %v1284_v8 = vadd.f32 -1.0, %v1092_v48 }
0x118f   :  { %1096 = vrot.lane.b32.xlu1 %v1284_v8, %s1425_s1 }
0x11fb   :  { %v1058_v22 = vpop.permute.xlu0 %1057 }
0x11fc   :  { %v1060_v9 = vmul.f32 %v1058_v22, %v1051_v54 }
0x11fe   :  { %1062 = vrot.lane.b32.xlu2 %v1060_v9, %s1425_s1 }
0x1201   :  { %v1097_v23 = vpop.permute.xlu1 %1096 }
0x1202   :  { %v1099_v24 = vmul.f32 %v1097_v23, %v1090_v21 }
0x1204   :  { %1101 = vrot.lane.b32.xlu0 %v1099_v24, %s1425_s1 }
0x1258   :  { %v1063_v25 = vpop.permute.xlu2 %1062 }
0x1259   :  { %v1065_v26 = vadd.f32 %v1063_v25, %v1055_v10 }
0x125b   :  { %1384 = vtanh.f32 %v1065_v26 }
0x1261   :  { %v1385_v27 = vpop.eup %1384 }
0x1262   :  { %1068 = vrot.lane.b32.xlu1 %v1385_v27, %s1425_s1 }
0x1276   :  { %v1102_v29 = vpop.permute.xlu0 %1101 }
0x1277   :  { %v1104_v30 = vadd.f32 %v1102_v29, %v1094_v28 }
0x1279   :  { %1386 = vtanh.f32 %v1104_v30 }
0x127f   :  { %v1387_v31 = vpop.eup %1386 }
0x1280   :  { %1107 = vrot.lane.b32.xlu2 %v1387_v31, %s1425_s1 }
0x12d4   :  { %v1069_v32 = vpop.permute.xlu1 %1068 }
0x12d5   :  { %v1071_v33 = vmul.f32 %v1069_v32, %v1051_v54 }
0x12d7   :  { %1112 = vrot.lane.b32.xlu0 %v1071_v33, %s1427_s16 }
0x12da   :  { %v1108_v34 = vpop.permute.xlu2 %1107 }
0x12db   :  { %v1110_v36 = vmul.f32 %v1108_v34, %v1090_v21 }
0x12dd   :  { %1116 = vrot.lane.b32.xlu1 %v1110_v36, %s1426_s15 }
0x1349   :  { %v1113_v38 = vpop.permute.xlu0 %1112 }
0x134f   :  { %v1117_v46 = vpop.permute.xlu1 %1116 }
0x1350   :  { %v1119_v47 = vsel %vm204_vm6, %v1113_v38, %v1117_v46 }
0x1351   :  { %1285 = vmatmul.msk.f32.vlgmr.msra.gmra.mxu3 %vm134_vm1, %v1119_v47 }
0x13d4   :  { %v1140_v35 = vpop.f32.mrf.mxu3 }
0x13d5   :  { %v1143_v51 = vadd.f32 %v1854_v11, %v1140_v35 }
0x13d7   :  { %v1286_v52 = vmul.f32 -1.442695, %v1143_v51 }
0x13d9   :  { %1388 = vpow2.f32 %v1286_v52 }
0x13df   :  { %v1389_v53 = vpop.eup %1388 }
0x13e0   :  { %v1147_v56 = vadd.f32 1.0, %v1389_v53 }
0x13e2   :  { %1390 = vrcp.f32 %v1147_v56  ;;  %v1159_v50 = vand.u32 2147483648, %v1147_v56  ;;  %v1157_v60 = vand.u32 2147483647, %v1147_v56  ;;  %vm1153_vm10 = vweird.f32 %v1147_v56 }
0x13e4   :  { %v1160_v63 = vor.u32 1.1754944e-38, %v1159_v50  ;;  %vm1158_vm12 = vcmp.eq.f32.partialorder %v1157_v60, 8.507059e+37 }
0x13e8   :  { %v1391_v57 = vpop.eup %1390 }
0x13e9   :  { %v1149_v37 = vmul.f32 %v1391_v57, %v1147_v56  ;;  %vm1154_vm9 = vweird.f32 %v1391_v57 }
0x13ea   :  { %vm1155_vm11 = vmor %vm1153_vm10, %vm1154_vm9 }
0x13eb   :  { %v1150_v58 = vsub.f32 1.0, %v1149_v37 }
0x13ed   :  { %v1151_v59 = vmul.f32 %v1391_v57, %v1150_v58 }
0x13ef   :  { %v1152_v61 = vadd.f32 %v1391_v57, %v1151_v59 }
0x13f1   :  { %v1156_v2 = vsel %vm1155_vm11, %v1391_v57, %v1152_v61 }
0x13f2   :  { %v1161_v13 = vsel %vm1158_vm12, %v1160_v63, %v1156_v2 }
0x13f3   :  { %v1163_v11 = vmul.f32 2.0, %v1161_v13  ;;  %v1165_v4 = vmul.f32 %v1161_v13, %v1104_v30 }
0x13f5   :  { %v1287_v49 = vadd.f32 -1.0, %v1163_v11 }
0x13f7   :  { %1167 = vrot.lane.b32.xlu2 %v1287_v49, %s1425_s1 }
0x1451   :  { %v1168_v15 = vpop.permute.xlu2 %1167 }
0x1452   :  { %v1170_v5 = vmul.f32 %v1168_v15, %v1161_v13 }
0x1454   :  { %1172 = vrot.lane.b32.xlu0 %v1170_v5, %s1425_s1 }
0x14c6   :  { %v1173_v16 = vpop.permute.xlu0 %1172 }
0x14c7   :  { %v1175_v17 = vadd.f32 %v1173_v16, %v1165_v4 }
0x14c9   :  { %1392 = vtanh.f32 %v1175_v17 }
0x14cf   :  { %v1393_v62 = vpop.eup %1392 }
0x14d0   :  { %1178 = vrot.lane.b32.xlu1 %v1393_v62, %s1425_s1 }
0x14d8   :  { %1187 = vrot.lane.b32.xlu1 %v1065_v26, %s1426_s15 }
0x1542   :  { %v1179_v1 = vpop.permute.xlu1 %1178 }
0x1543   :  { %v1181_v39 = vmul.f32 %v1179_v1, %v1161_v13 }
0x1545   :  { %v1199_v40 = vmax.f32 %v1181_v39, 0.0  ;;  %1183 = vrot.lane.b32.xlu0 %v1181_v39, %s1426_s15 }
0x1547   :  { %1202 = vrot.lane.b32.xlu2 %v1199_v40, %s1427_s16 }
0x154a   :  { %v1188_v3 = vpop.permute.xlu1 %1187 }
0x154f   :  { %1191 = vrot.lane.b32.xlu2 %v1175_v17, %s1425_s1 }
0x15a1   :  { %v1203_v41 = vpop.permute.xlu2 %1202 }
0x15a2   :  { %1288 = vmatmul.msk.f32.vlgmr.msra.gmra.mxu0 %vm204_vm6, %v1203_v41 }
0x15a9   :  { %v1192_v43 = vpop.permute.xlu2 %1191 }
0x15b7   :  { %v1184_v42 = vpop.permute.xlu0 %1183 }
0x15b8   :  { %v1194_v54 = vsel %vm204_vm6, %v1113_v38, %v1184_v42 }
0x15b9   :  { %v1195_v6 = vsel %vm134_vm1, %v1194_v54, %v1188_v3 }
0x15ba   :  { %v1197_v19 = vsel %vm1196_vm13, %v1195_v6, %v1192_v43 }
0x15bb   :  { %1198 = vst [vmem:[%s1890_s4] sm:$0xff] %v1197_v19 }
0x161f   :  { %v1223_v7 = vpop.f32.mrf.mxu0 }
0x1620   :  { %v1224_v12 = vadd.f32 %v1297_v44, %v1223_v7 }
0x1622   :  { %1226 = vst [vmem:[%s1890_s4 + $0x8] sm:$0xff] %v1224_v12 }
0x1623   :  { %1231 = vsyncpa [#allocation3], 1 }

</bundles_post_ra>
